<compile_context>
chip_gen: v7x
topology: tpu7x:2x2x1
jax: 0.10.0
libtpu: 0.0.40
codegen_flags: <defaults>
</compile_context>

<pallas_src>
import math

import jax
import jax.numpy as jnp
import numpy as np
from jax.experimental import pallas as pl
from jax.experimental.pallas import tpu as pltpu


# ---------------------------------------------------------------------------
# Small config consistent with CNNModel.__init__
# ---------------------------------------------------------------------------
CFG = dict(
    input_channels=1,
    feature_dim=16,
    num_classes=10,
    context_window=8,
    cnn_channels=[8, 16, 32],
    kernel_sizes=[3, 3, 3],
    fc_dims=[64, 32],
)

LANE = 128


def _conv_chain_shapes(cfg):
    """Static per-layer shapes: stride-1 'same' conv, 2x2/stride-2 pool."""
    h, w = cfg["context_window"], cfg["feature_dim"]
    cin = cfg["input_channels"]
    shapes = []
    for cout, k in zip(cfg["cnn_channels"], cfg["kernel_sizes"]):
        pad = k // 2
        hc, wc = h + 2 * pad - k + 1, w + 2 * pad - k + 1
        ho, wo = hc // 2, wc // 2
        shapes.append(dict(Hin=h, Win=w, Cin=cin, K=k,
                           Hc=hc, Wc=wc, Cout=cout, Ho=ho, Wo=wo))
        h, w, cin = ho, wo, cout
    return shapes


# ---------------------------------------------------------------------------
# Wrapper-side weight restructuring (run ONCE per parameter set)
# ---------------------------------------------------------------------------
def _conv_pool_matrix(w, shp):
    """Conv('same') as one matrix, with output columns grouped by 2x2-pool
    phase so pooling becomes two block-max ops in the kernel.

    Rows   : (cin, h', w')                      (layer input lane order)
    Columns: (phase = hpar*2+wpar, cout, i, j)  (conv output, pool-grouped)
    """
    K = shp["K"]
    pad = K // 2
    Hin, Win, Cin = shp["Hin"], shp["Win"], shp["Cin"]
    Cout, Ho, Wo = shp["Cout"], shp["Ho"], shp["Wo"]
    Sin, Sp = Hin * Win, Ho * Wo

    sel = np.zeros((K, K, Sin, 4, Sp), np.float32)
    for kh in range(K):
        for kw in range(K):
            for hpar in range(2):
                for wpar in range(2):
                    for i in range(Ho):
                        for j in range(Wo):
                            hp = 2 * i + hpar + kh - pad
                            wp = 2 * j + wpar + kw - pad
                            if 0 <= hp < Hin and 0 <= wp < Win:
                                sel[kh, kw, hp * Win + wp,
                                    hpar * 2 + wpar, i * Wo + j] = 1.0
    # (K,K,Cin,Cout) x (K,K,Sin,4,Sp) -> (Cin,Sin,4,Cout,Sp)
    G = jnp.einsum("xyio,xysfp->isfop", w, jnp.asarray(sel),
                   precision=jax.lax.Precision.HIGHEST)
    return G.reshape(Cin * Sin, 4 * Cout * Sp)


def build_kernel_params(params, cfg):
    """Fold conv weights into pool-grouped matrices, expand BN scale/bias to
    per-lane rows, pad the final classifier to a lane-dense width."""
    shapes = _conv_chain_shapes(cfg)
    nc = cfg["num_classes"]
    nc_pad = ((nc + LANE - 1) // LANE) * LANE

    kp = {"conv": [], "fc_hidden": [], "fc_final": None}
    for (w, scale, bias), shp in zip(params["conv"], shapes):
        G = _conv_pool_matrix(w, shp)
        Cout, Sp = shp["Cout"], shp["Ho"] * shp["Wo"]
        co_map = np.tile(np.repeat(np.arange(Cout), Sp), 4)   # lane -> channel
        kp["conv"].append((G,
                           scale[0][co_map][None, :],
                           bias[0][co_map][None, :]))
    for (w, s, b) in params["fc_hidden"]:
        kp["fc_hidden"].append((w, s, b))
    wf, bf = params["fc_final"]
    kp["fc_final"] = (jnp.pad(wf, ((0, 0), (0, nc_pad - nc))),
                      jnp.pad(bf, ((0, 0), (0, nc_pad - nc))))
    return kp


# ---------------------------------------------------------------------------
# Fused whole-network kernel
# ---------------------------------------------------------------------------
def _make_kernel(n_conv, pool_sizes, n_fc):
    def kernel(*refs):
        it = iter(refs)
        x_ref = next(it)                                           # (tb, H0*W0)
        conv_refs = [(next(it), next(it), next(it)) for _ in range(n_conv)]
        fc_refs = [(next(it), next(it), next(it)) for _ in range(n_fc)]
        wf_ref = next(it)
        bf_ref = next(it)
        o_ref = next(it)                                           # (tb, nc_pad)

        a = x_ref[...]
        # conv + BN + ReLU + 2x2 pool, one matmul + 4 vector ops per layer
        for (g_ref, s_ref, b_ref), P in zip(conv_refs, pool_sizes):
            y = jnp.dot(a, g_ref[...], preferred_element_type=jnp.float32)
            y = jnp.maximum(y * s_ref[...] + b_ref[...], 0.0)      # BN + ReLU
            h = jnp.maximum(y[:, :2 * P], y[:, 2 * P:])            # pool: h-pairs
            a = jnp.maximum(h[:, :P], h[:, P:])                    # pool: w-pairs

        # FC stack (folded BatchNorm1d, dropout = identity)
        for (w_ref, s_ref, b_ref) in fc_refs:
            a = jnp.dot(a, w_ref[...], preferred_element_type=jnp.float32)
            a = jnp.maximum(a * s_ref[...] + b_ref[...], 0.0)

        o_ref[...] = (jnp.dot(a, wf_ref[...],
                              preferred_element_type=jnp.float32) + bf_ref[...])
    return kernel


# ---------------------------------------------------------------------------
# Wrapper
# ---------------------------------------------------------------------------
def preprocess(x, cfg):
    x = jnp.asarray(x, jnp.float32)
    if x.ndim == 2:                                   # (B, feat) -> repeat ctx
        x = jnp.repeat(x[:, None, :], cfg["context_window"], axis=1)
    B, ctx, fd = x.shape
    if fd > cfg["feature_dim"]:
        x = x[:, :, :cfg["feature_dim"]]
    elif fd < cfg["feature_dim"]:
        pad = jnp.zeros((B, ctx, cfg["feature_dim"] - fd), x.dtype)
        x = jnp.concatenate([x, pad], axis=2)
    return x                                          # (B, H0, W0)


def cnn_model_forward(x, kparams, cfg, batch_tile=8):
    # TODO(synk): training-mode dropout / batch-stat BatchNorm not implemented
    # (inference semantics: BN running stats folded, dropout = identity).
    xh = preprocess(x, cfg)
    B, H0, W0 = xh.shape
    x2 = xh.reshape(B, H0 * W0)                       # lane-dense input rows

    shapes = _conv_chain_shapes(cfg)
    pool_sizes = [s["Cout"] * s["Ho"] * s["Wo"] for s in shapes]
    nc = cfg["num_classes"]
    nc_pad = ((nc + LANE - 1) // LANE) * LANE

    tb = B if B <= batch_tile else batch_tile
    B_pad = ((B + tb - 1) // tb) * tb
    if B_pad != B:
        x2 = jnp.pad(x2, ((0, B_pad - B), (0, 0)))
    nb = B_pad // tb

    inputs = [x2]
    for (g, s, b) in kparams["conv"]:
        inputs += [g, s, b]
    for (w, s, b) in kparams["fc_hidden"]:
        inputs += [w, s, b]
    wf, bf = kparams["fc_final"]
    inputs += [wf, bf]

    in_specs = [pl.BlockSpec((tb, H0 * W0), lambda i: (i, 0))]
    for arr in inputs[1:]:
        in_specs.append(pl.BlockSpec(arr.shape, lambda i: (0, 0)))

    kernel = _make_kernel(len(kparams["conv"]), pool_sizes,
                          len(kparams["fc_hidden"]))
    out = pl.pallas_call(
        kernel,
        out_shape=jax.ShapeDtypeStruct((B_pad, nc_pad), jnp.float32),
        grid=(nb,),
        in_specs=in_specs,
        out_specs=pl.BlockSpec((tb, nc_pad), lambda i: (i, 0)),
        compiler_params=pltpu.CompilerParams(
            dimension_semantics=("parallel",)),
    )(*inputs)
    return out[:B, :nc]


# ---------------------------------------------------------------------------
# Pure-JAX reference (for correctness check)
# ---------------------------------------------------------------------------
def reference_forward(x, params, cfg):
    h = preprocess(x, cfg)[:, :, :, None]             # NHWC, C = 1
    for (w, scale, bias) in params["conv"]:
        p = w.shape[0] // 2
        hp = jnp.pad(h, ((0, 0), (p, p), (p, p), (0, 0)))
        conv = jax.lax.conv_general_dilated(
            hp, w, window_strides=(1, 1), padding="VALID",
            dimension_numbers=("NHWC", "HWIO", "NHWC"),
            precision=jax.lax.Precision.HIGHEST)
        y = jnp.maximum(conv * scale[0] + bias[0], 0.0)
        h = jax.lax.reduce_window(y, -jnp.inf, jax.lax.max,
                                  (1, 2, 2, 1), (1, 2, 2, 1), "VALID")
    B = h.shape[0]
    h = jnp.transpose(h, (0, 3, 1, 2)).reshape(B, -1)   # NCHW flatten
    for (w, s, b) in params["fc_hidden"]:
        h = jnp.maximum(
            jnp.dot(h, w, precision=jax.lax.Precision.HIGHEST) * s[0] + b[0],
            0.0)
    wf, bf = params["fc_final"]
    return jnp.dot(h, wf, precision=jax.lax.Precision.HIGHEST) + bf[0]


# ---------------------------------------------------------------------------
# Deterministic synthetic parameters (BN/conv bias folded into scale & bias)
# ---------------------------------------------------------------------------
def init_params(key, cfg):
    eps = 1e-5
    params = {"conv": [], "fc_hidden": [], "fc_final": None}

    def bn_fold(key, lin_bias, dim):
        kg, kbt, km, kv = jax.random.split(key, 4)
        gamma = 1.0 + 0.1 * jax.random.normal(kg, (dim,), jnp.float32)
        beta = 0.1 * jax.random.normal(kbt, (dim,), jnp.float32)
        mean = 0.1 * jax.random.normal(km, (dim,), jnp.float32)
        var = jax.random.uniform(kv, (dim,), jnp.float32, minval=0.5, maxval=1.5)
        scale = gamma / jnp.sqrt(var + eps)
        bias = beta + (lin_bias - mean) * scale
        return scale[None, :], bias[None, :]

    in_c = cfg["input_channels"]
    for out_c, k in zip(cfg["cnn_channels"], cfg["kernel_sizes"]):
        key, kw, kb, kbn = jax.random.split(key, 4)
        fan_in = k * k * in_c
        w = jax.random.normal(kw, (k, k, in_c, out_c), jnp.float32) / math.sqrt(fan_in)
        b = 0.1 * jax.random.normal(kb, (out_c,), jnp.float32)
        scale, bias = bn_fold(kbn, b, out_c)
        params["conv"].append((w, scale, bias))
        in_c = out_c

    last = _conv_chain_shapes(cfg)[-1]
    in_dim = last["Ho"] * last["Wo"] * cfg["cnn_channels"][-1]
    for out_dim in cfg["fc_dims"]:
        key, kw, kb, kbn = jax.random.split(key, 4)
        w = jax.random.normal(kw, (in_dim, out_dim), jnp.float32) / math.sqrt(in_dim)
        b = 0.1 * jax.random.normal(kb, (out_dim,), jnp.float32)
        scale, bias = bn_fold(kbn, b, out_dim)
        params["fc_hidden"].append((w, scale, bias))
        in_dim = out_dim

    key, kw, kb = jax.random.split(key, 3)
    wf = jax.random.normal(kw, (in_dim, cfg["num_classes"]), jnp.float32) / math.sqrt(in_dim)
    bf = 0.1 * jax.random.normal(kb, (cfg["num_classes"],), jnp.float32)
    params["fc_final"] = (wf, bf[None, :])
    return params


# ---------------------------------------------------------------------------
if __name__ == "__main__":
    key = jax.random.PRNGKey(0)
    kx, kp = jax.random.split(key)
    B = 16
    x = jax.random.normal(
        kx, (B, CFG["context_window"], CFG["feature_dim"]), jnp.float32)
    params = init_params(kp, CFG)

    # one-time restructuring of weights into kernel-ready matrices
    kparams = build_kernel_params(params, CFG)

    fwd = jax.jit(lambda xx, pp: cnn_model_forward(xx, pp, CFG))
    out = jax.block_until_ready(fwd(x, kparams))
    assert out.shape == (B, CFG["num_classes"]), out.shape

    ref = jax.block_until_ready(reference_forward(x, params, CFG))
    np.testing.assert_allclose(np.asarray(out), np.asarray(ref),
                               rtol=2e-2, atol=2e-2)
    print("KERNEL_OK")
</pallas_src>

<mosaic_0001>
module attributes {stable_mosaic.version = 11 : i64} {
  func.func @kernel(%arg0: i32, %arg1: memref<8x128xf32, #tpu.memory_space<vmem>>, %arg2: memref<128x1024xf32, #tpu.memory_space<vmem>>, %arg3: memref<1x1024xf32, #tpu.memory_space<vmem>>, %arg4: memref<1x1024xf32, #tpu.memory_space<vmem>>, %arg5: memref<256x512xf32, #tpu.memory_space<vmem>>, %arg6: memref<1x512xf32, #tpu.memory_space<vmem>>, %arg7: memref<1x512xf32, #tpu.memory_space<vmem>>, %arg8: memref<128x256xf32, #tpu.memory_space<vmem>>, %arg9: memref<1x256xf32, #tpu.memory_space<vmem>>, %arg10: memref<1x256xf32, #tpu.memory_space<vmem>>, %arg11: memref<64x64xf32, #tpu.memory_space<vmem>>, %arg12: memref<1x64xf32, #tpu.memory_space<vmem>>, %arg13: memref<1x64xf32, #tpu.memory_space<vmem>>, %arg14: memref<64x32xf32, #tpu.memory_space<vmem>>, %arg15: memref<1x32xf32, #tpu.memory_space<vmem>>, %arg16: memref<1x32xf32, #tpu.memory_space<vmem>>, %arg17: memref<32x128xf32, #tpu.memory_space<vmem>>, %arg18: memref<1x128xf32, #tpu.memory_space<vmem>>, %arg19: memref<8x128xf32, #tpu.memory_space<vmem>>) attributes {dimension_semantics = [#tpu.dimension_semantics<parallel>], iteration_bounds = array<i64: 2>, scalar_prefetch = 0 : i64, scratch_operands = 0 : i64, tpu.core_type = #tpu.core_type<tc>, window_params = [{transform_indices = @transform_0, window_bounds = array<i64: 8, 128>}, {pipeline_mode = #tpu.pipeline_mode<synchronous>, transform_indices = @transform_1, window_bounds = array<i64: 128, 1024>}, {pipeline_mode = #tpu.pipeline_mode<synchronous>, transform_indices = @transform_2, window_bounds = array<i64: 1, 1024>}, {pipeline_mode = #tpu.pipeline_mode<synchronous>, transform_indices = @transform_3, window_bounds = array<i64: 1, 1024>}, {pipeline_mode = #tpu.pipeline_mode<synchronous>, transform_indices = @transform_4, window_bounds = array<i64: 256, 512>}, {pipeline_mode = #tpu.pipeline_mode<synchronous>, transform_indices = @transform_5, window_bounds = array<i64: 1, 512>}, {pipeline_mode = #tpu.pipeline_mode<synchronous>, transform_indices = @transform_6, window_bounds = array<i64: 1, 512>}, {pipeline_mode = #tpu.pipeline_mode<synchronous>, transform_indices = @transform_7, window_bounds = array<i64: 128, 256>}, {pipeline_mode = #tpu.pipeline_mode<synchronous>, transform_indices = @transform_8, window_bounds = array<i64: 1, 256>}, {pipeline_mode = #tpu.pipeline_mode<synchronous>, transform_indices = @transform_9, window_bounds = array<i64: 1, 256>}, {pipeline_mode = #tpu.pipeline_mode<synchronous>, transform_indices = @transform_10, window_bounds = array<i64: 64, 64>}, {pipeline_mode = #tpu.pipeline_mode<synchronous>, transform_indices = @transform_11, window_bounds = array<i64: 1, 64>}, {pipeline_mode = #tpu.pipeline_mode<synchronous>, transform_indices = @transform_12, window_bounds = array<i64: 1, 64>}, {pipeline_mode = #tpu.pipeline_mode<synchronous>, transform_indices = @transform_13, window_bounds = array<i64: 64, 32>}, {pipeline_mode = #tpu.pipeline_mode<synchronous>, transform_indices = @transform_14, window_bounds = array<i64: 1, 32>}, {pipeline_mode = #tpu.pipeline_mode<synchronous>, transform_indices = @transform_15, window_bounds = array<i64: 1, 32>}, {pipeline_mode = #tpu.pipeline_mode<synchronous>, transform_indices = @transform_16, window_bounds = array<i64: 32, 128>}, {pipeline_mode = #tpu.pipeline_mode<synchronous>, transform_indices = @transform_17, window_bounds = array<i64: 1, 128>}, {transform_indices = @transform_18, window_bounds = array<i64: 8, 128>}]} {
    %c0 = arith.constant 0 : index
    %c0_0 = arith.constant 0 : index
    %0 = vector.load %arg1[%c0, %c0_0] : memref<8x128xf32, #tpu.memory_space<vmem>>, vector<8x128xf32>
    %c0_1 = arith.constant 0 : index
    %c0_2 = arith.constant 0 : index
    %1 = vector.load %arg2[%c0_1, %c0_2] : memref<128x1024xf32, #tpu.memory_space<vmem>>, vector<128x1024xf32>
    %cst = arith.constant dense<0.000000e+00> : vector<8x1024xf32>
    %2 = tpu.matmul %0, %1, %cst {dimension_numbers = #tpu.dot_dimension_numbers<[1], [0], [0], [1], [0, 0, 1, 1], [], []>} : vector<8x128xf32>, vector<128x1024xf32>, vector<8x1024xf32> -> vector<8x1024xf32>
    %c0_3 = arith.constant 0 : index
    %c0_4 = arith.constant 0 : index
    %3 = vector.load %arg3[%c0_3, %c0_4] : memref<1x1024xf32, #tpu.memory_space<vmem>>, vector<1x1024xf32>
    %4 = vector.broadcast %3 : vector<1x1024xf32> to vector<8x1024xf32>
    %5 = arith.mulf %2, %4 : vector<8x1024xf32>
    %c0_5 = arith.constant 0 : index
    %c0_6 = arith.constant 0 : index
    %6 = vector.load %arg4[%c0_5, %c0_6] : memref<1x1024xf32, #tpu.memory_space<vmem>>, vector<1x1024xf32>
    %7 = vector.broadcast %6 : vector<1x1024xf32> to vector<8x1024xf32>
    %8 = arith.addf %5, %7 : vector<8x1024xf32>
    %cst_7 = arith.constant 0.000000e+00 : f32
    %9 = vector.broadcast %cst_7 : f32 to vector<8x1024xf32>
    %10 = arith.maximumf %8, %9 : vector<8x1024xf32>
    %11 = vector.extract_strided_slice %10 {offsets = [0, 0], sizes = [8, 512], strides = [1, 1]} : vector<8x1024xf32> to vector<8x512xf32>
    %12 = vector.extract_strided_slice %10 {offsets = [0, 512], sizes = [8, 512], strides = [1, 1]} : vector<8x1024xf32> to vector<8x512xf32>
    %13 = arith.maximumf %11, %12 : vector<8x512xf32>
    %14 = vector.extract_strided_slice %13 {offsets = [0, 0], sizes = [8, 256], strides = [1, 1]} : vector<8x512xf32> to vector<8x256xf32>
    %15 = vector.extract_strided_slice %13 {offsets = [0, 256], sizes = [8, 256], strides = [1, 1]} : vector<8x512xf32> to vector<8x256xf32>
    %16 = arith.maximumf %14, %15 : vector<8x256xf32>
    %c0_8 = arith.constant 0 : index
    %c0_9 = arith.constant 0 : index
    %17 = vector.load %arg5[%c0_8, %c0_9] : memref<256x512xf32, #tpu.memory_space<vmem>>, vector<256x512xf32>
    %cst_10 = arith.constant dense<0.000000e+00> : vector<8x512xf32>
    %18 = tpu.matmul %16, %17, %cst_10 {dimension_numbers = #tpu.dot_dimension_numbers<[1], [0], [0], [1], [0, 0, 1, 1], [], []>} : vector<8x256xf32>, vector<256x512xf32>, vector<8x512xf32> -> vector<8x512xf32>
    %c0_11 = arith.constant 0 : index
    %c0_12 = arith.constant 0 : index
    %19 = vector.load %arg6[%c0_11, %c0_12] : memref<1x512xf32, #tpu.memory_space<vmem>>, vector<1x512xf32>
    %20 = vector.broadcast %19 : vector<1x512xf32> to vector<8x512xf32>
    %21 = arith.mulf %18, %20 : vector<8x512xf32>
    %c0_13 = arith.constant 0 : index
    %c0_14 = arith.constant 0 : index
    %22 = vector.load %arg7[%c0_13, %c0_14] : memref<1x512xf32, #tpu.memory_space<vmem>>, vector<1x512xf32>
    %23 = vector.broadcast %22 : vector<1x512xf32> to vector<8x512xf32>
    %24 = arith.addf %21, %23 : vector<8x512xf32>
    %cst_15 = arith.constant 0.000000e+00 : f32
    %25 = vector.broadcast %cst_15 : f32 to vector<8x512xf32>
    %26 = arith.maximumf %24, %25 : vector<8x512xf32>
    %27 = vector.extract_strided_slice %26 {offsets = [0, 0], sizes = [8, 256], strides = [1, 1]} : vector<8x512xf32> to vector<8x256xf32>
    %28 = vector.extract_strided_slice %26 {offsets = [0, 256], sizes = [8, 256], strides = [1, 1]} : vector<8x512xf32> to vector<8x256xf32>
    %29 = arith.maximumf %27, %28 : vector<8x256xf32>
    %30 = vector.extract_strided_slice %29 {offsets = [0, 0], sizes = [8, 128], strides = [1, 1]} : vector<8x256xf32> to vector<8x128xf32>
    %31 = vector.extract_strided_slice %29 {offsets = [0, 128], sizes = [8, 128], strides = [1, 1]} : vector<8x256xf32> to vector<8x128xf32>
    %32 = arith.maximumf %30, %31 : vector<8x128xf32>
    %c0_16 = arith.constant 0 : index
    %c0_17 = arith.constant 0 : index
    %33 = vector.load %arg8[%c0_16, %c0_17] : memref<128x256xf32, #tpu.memory_space<vmem>>, vector<128x256xf32>
    %cst_18 = arith.constant dense<0.000000e+00> : vector<8x256xf32>
    %34 = tpu.matmul %32, %33, %cst_18 {dimension_numbers = #tpu.dot_dimension_numbers<[1], [0], [0], [1], [0, 0, 1, 1], [], []>} : vector<8x128xf32>, vector<128x256xf32>, vector<8x256xf32> -> vector<8x256xf32>
    %c0_19 = arith.constant 0 : index
    %c0_20 = arith.constant 0 : index
    %35 = vector.load %arg9[%c0_19, %c0_20] : memref<1x256xf32, #tpu.memory_space<vmem>>, vector<1x256xf32>
    %36 = vector.broadcast %35 : vector<1x256xf32> to vector<8x256xf32>
    %37 = arith.mulf %34, %36 : vector<8x256xf32>
    %c0_21 = arith.constant 0 : index
    %c0_22 = arith.constant 0 : index
    %38 = vector.load %arg10[%c0_21, %c0_22] : memref<1x256xf32, #tpu.memory_space<vmem>>, vector<1x256xf32>
    %39 = vector.broadcast %38 : vector<1x256xf32> to vector<8x256xf32>
    %40 = arith.addf %37, %39 : vector<8x256xf32>
    %cst_23 = arith.constant 0.000000e+00 : f32
    %41 = vector.broadcast %cst_23 : f32 to vector<8x256xf32>
    %42 = arith.maximumf %40, %41 : vector<8x256xf32>
    %43 = vector.extract_strided_slice %42 {offsets = [0, 0], sizes = [8, 128], strides = [1, 1]} : vector<8x256xf32> to vector<8x128xf32>
    %44 = vector.extract_strided_slice %42 {offsets = [0, 128], sizes = [8, 128], strides = [1, 1]} : vector<8x256xf32> to vector<8x128xf32>
    %45 = arith.maximumf %43, %44 : vector<8x128xf32>
    %46 = vector.extract_strided_slice %45 {offsets = [0, 0], sizes = [8, 64], strides = [1, 1]} : vector<8x128xf32> to vector<8x64xf32>
    %47 = vector.extract_strided_slice %45 {offsets = [0, 64], sizes = [8, 64], strides = [1, 1]} : vector<8x128xf32> to vector<8x64xf32>
    %48 = arith.maximumf %46, %47 : vector<8x64xf32>
    %c0_24 = arith.constant 0 : index
    %c0_25 = arith.constant 0 : index
    %49 = vector.load %arg11[%c0_24, %c0_25] : memref<64x64xf32, #tpu.memory_space<vmem>>, vector<64x64xf32>
    %cst_26 = arith.constant dense<0.000000e+00> : vector<8x64xf32>
    %50 = tpu.matmul %48, %49, %cst_26 {dimension_numbers = #tpu.dot_dimension_numbers<[1], [0], [0], [1], [0, 0, 1, 1], [], []>} : vector<8x64xf32>, vector<64x64xf32>, vector<8x64xf32> -> vector<8x64xf32>
    %c0_27 = arith.constant 0 : index
    %c0_28 = arith.constant 0 : index
    %51 = vector.load %arg12[%c0_27, %c0_28] : memref<1x64xf32, #tpu.memory_space<vmem>>, vector<1x64xf32>
    %52 = vector.broadcast %51 : vector<1x64xf32> to vector<8x64xf32>
    %53 = arith.mulf %50, %52 : vector<8x64xf32>
    %c0_29 = arith.constant 0 : index
    %c0_30 = arith.constant 0 : index
    %54 = vector.load %arg13[%c0_29, %c0_30] : memref<1x64xf32, #tpu.memory_space<vmem>>, vector<1x64xf32>
    %55 = vector.broadcast %54 : vector<1x64xf32> to vector<8x64xf32>
    %56 = arith.addf %53, %55 : vector<8x64xf32>
    %cst_31 = arith.constant 0.000000e+00 : f32
    %57 = vector.broadcast %cst_31 : f32 to vector<8x64xf32>
    %58 = arith.maximumf %56, %57 : vector<8x64xf32>
    %c0_32 = arith.constant 0 : index
    %c0_33 = arith.constant 0 : index
    %59 = vector.load %arg14[%c0_32, %c0_33] : memref<64x32xf32, #tpu.memory_space<vmem>>, vector<64x32xf32>
    %cst_34 = arith.constant dense<0.000000e+00> : vector<8x32xf32>
    %60 = tpu.matmul %58, %59, %cst_34 {dimension_numbers = #tpu.dot_dimension_numbers<[1], [0], [0], [1], [0, 0, 1, 1], [], []>} : vector<8x64xf32>, vector<64x32xf32>, vector<8x32xf32> -> vector<8x32xf32>
    %c0_35 = arith.constant 0 : index
    %c0_36 = arith.constant 0 : index
    %61 = vector.load %arg15[%c0_35, %c0_36] : memref<1x32xf32, #tpu.memory_space<vmem>>, vector<1x32xf32>
    %62 = vector.broadcast %61 : vector<1x32xf32> to vector<8x32xf32>
    %63 = arith.mulf %60, %62 : vector<8x32xf32>
    %c0_37 = arith.constant 0 : index
    %c0_38 = arith.constant 0 : index
    %64 = vector.load %arg16[%c0_37, %c0_38] : memref<1x32xf32, #tpu.memory_space<vmem>>, vector<1x32xf32>
    %65 = vector.broadcast %64 : vector<1x32xf32> to vector<8x32xf32>
    %66 = arith.addf %63, %65 : vector<8x32xf32>
    %cst_39 = arith.constant 0.000000e+00 : f32
    %67 = vector.broadcast %cst_39 : f32 to vector<8x32xf32>
    %68 = arith.maximumf %66, %67 : vector<8x32xf32>
    %c0_40 = arith.constant 0 : index
    %c0_41 = arith.constant 0 : index
    %69 = vector.load %arg17[%c0_40, %c0_41] : memref<32x128xf32, #tpu.memory_space<vmem>>, vector<32x128xf32>
    %cst_42 = arith.constant dense<0.000000e+00> : vector<8x128xf32>
    %70 = tpu.matmul %68, %69, %cst_42 {dimension_numbers = #tpu.dot_dimension_numbers<[1], [0], [0], [1], [0, 0, 1, 1], [], []>} : vector<8x32xf32>, vector<32x128xf32>, vector<8x128xf32> -> vector<8x128xf32>
    %c0_43 = arith.constant 0 : index
    %c0_44 = arith.constant 0 : index
    %71 = vector.load %arg18[%c0_43, %c0_44] : memref<1x128xf32, #tpu.memory_space<vmem>>, vector<1x128xf32>
    %72 = vector.broadcast %71 : vector<1x128xf32> to vector<8x128xf32>
    %73 = arith.addf %70, %72 : vector<8x128xf32>
    %c0_45 = arith.constant 0 : index
    %c0_46 = arith.constant 0 : index
    %74 = vector.load %arg19[%c0_45, %c0_46] : memref<8x128xf32, #tpu.memory_space<vmem>>, vector<8x128xf32>
    tpu.vector_store %arg19[%c0_45, %c0_46], %73 {strides = array<i32>} : memref<8x128xf32, #tpu.memory_space<vmem>>, vector<8x128xf32>,
    return
  }
  func.func @transform_0(%arg0: i32) -> (i32, i32) {
    %c0_i32 = arith.constant 0 : i32
    %c0_i32_0 = arith.constant 0 : i32
    return %arg0, %c0_i32 : i32, i32
  }
  func.func @transform_1(%arg0: i32) -> (i32, i32) {
    %c0_i32 = arith.constant 0 : i32
    %c0_i32_0 = arith.constant 0 : i32
    %c0_i32_1 = arith.constant 0 : i32
    return %c0_i32, %c0_i32_0 : i32, i32
  }
  func.func @transform_2(%arg0: i32) -> (i32, i32) {
    %c0_i32 = arith.constant 0 : i32
    %c0_i32_0 = arith.constant 0 : i32
    %c0_i32_1 = arith.constant 0 : i32
    return %c0_i32, %c0_i32_0 : i32, i32
  }
  func.func @transform_3(%arg0: i32) -> (i32, i32) {
    %c0_i32 = arith.constant 0 : i32
    %c0_i32_0 = arith.constant 0 : i32
    %c0_i32_1 = arith.constant 0 : i32
    return %c0_i32, %c0_i32_0 : i32, i32
  }
  func.func @transform_4(%arg0: i32) -> (i32, i32) {
    %c0_i32 = arith.constant 0 : i32
    %c0_i32_0 = arith.constant 0 : i32
    %c0_i32_1 = arith.constant 0 : i32
    return %c0_i32, %c0_i32_0 : i32, i32
  }
  func.func @transform_5(%arg0: i32) -> (i32, i32) {
    %c0_i32 = arith.constant 0 : i32
    %c0_i32_0 = arith.constant 0 : i32
    %c0_i32_1 = arith.constant 0 : i32
    return %c0_i32, %c0_i32_0 : i32, i32
  }
  func.func @transform_6(%arg0: i32) -> (i32, i32) {
    %c0_i32 = arith.constant 0 : i32
    %c0_i32_0 = arith.constant 0 : i32
    %c0_i32_1 = arith.constant 0 : i32
    return %c0_i32, %c0_i32_0 : i32, i32
  }
  func.func @transform_7(%arg0: i32) -> (i32, i32) {
    %c0_i32 = arith.constant 0 : i32
    %c0_i32_0 = arith.constant 0 : i32
    %c0_i32_1 = arith.constant 0 : i32
    return %c0_i32, %c0_i32_0 : i32, i32
  }
  func.func @transform_8(%arg0: i32) -> (i32, i32) {
    %c0_i32 = arith.constant 0 : i32
    %c0_i32_0 = arith.constant 0 : i32
    %c0_i32_1 = arith.constant 0 : i32
    return %c0_i32, %c0_i32_0 : i32, i32
  }
  func.func @transform_9(%arg0: i32) -> (i32, i32) {
    %c0_i32 = arith.constant 0 : i32
    %c0_i32_0 = arith.constant 0 : i32
    %c0_i32_1 = arith.constant 0 : i32
    return %c0_i32, %c0_i32_0 : i32, i32
  }
  func.func @transform_10(%arg0: i32) -> (i32, i32) {
    %c0_i32 = arith.constant 0 : i32
    %c0_i32_0 = arith.constant 0 : i32
    %c0_i32_1 = arith.constant 0 : i32
    return %c0_i32, %c0_i32_0 : i32, i32
  }
  func.func @transform_11(%arg0: i32) -> (i32, i32) {
    %c0_i32 = arith.constant 0 : i32
    %c0_i32_0 = arith.constant 0 : i32
    %c0_i32_1 = arith.constant 0 : i32
    return %c0_i32, %c0_i32_0 : i32, i32
  }
  func.func @transform_12(%arg0: i32) -> (i32, i32) {
    %c0_i32 = arith.constant 0 : i32
    %c0_i32_0 = arith.constant 0 : i32
    %c0_i32_1 = arith.constant 0 : i32
    return %c0_i32, %c0_i32_0 : i32, i32
  }
  func.func @transform_13(%arg0: i32) -> (i32, i32) {
    %c0_i32 = arith.constant 0 : i32
    %c0_i32_0 = arith.constant 0 : i32
    %c0_i32_1 = arith.constant 0 : i32
    return %c0_i32, %c0_i32_0 : i32, i32
  }
  func.func @transform_14(%arg0: i32) -> (i32, i32) {
    %c0_i32 = arith.constant 0 : i32
    %c0_i32_0 = arith.constant 0 : i32
    %c0_i32_1 = arith.constant 0 : i32
    return %c0_i32, %c0_i32_0 : i32, i32
  }
  func.func @transform_15(%arg0: i32) -> (i32, i32) {
    %c0_i32 = arith.constant 0 : i32
    %c0_i32_0 = arith.constant 0 : i32
    %c0_i32_1 = arith.constant 0 : i32
    return %c0_i32, %c0_i32_0 : i32, i32
  }
  func.func @transform_16(%arg0: i32) -> (i32, i32) {
    %c0_i32 = arith.constant 0 : i32
    %c0_i32_0 = arith.constant 0 : i32
    %c0_i32_1 = arith.constant 0 : i32
    return %c0_i32, %c0_i32_0 : i32, i32
  }
  func.func @transform_17(%arg0: i32) -> (i32, i32) {
    %c0_i32 = arith.constant 0 : i32
    %c0_i32_0 = arith.constant 0 : i32
    %c0_i32_1 = arith.constant 0 : i32
    return %c0_i32, %c0_i32_0 : i32, i32
  }
  func.func @transform_18(%arg0: i32) -> (i32, i32) {
    %c0_i32 = arith.constant 0 : i32
    %c0_i32_0 = arith.constant 0 : i32
    return %arg0, %c0_i32 : i32, i32
  }
}

</mosaic_0001>

<bundles_post_ra>
// kernel: _lambda_.1
= control target key start
LH: loop header
LB: loop body
LE: loop exit
PB: predicated region body
PF: predicated region fallthrough
CT: control target
= control target key end

     0   :  { %s3849_s0 = inlined_call_operand.vmem [shape: f32[16,128], index: 0, kind: input, shape index: {}]   ;;  %s3850_s1 = inlined_call_operand.hbm [shape: f32[128,1024], index: 1, kind: input, shape index: {}]   ;;  %s3851_s2 = inlined_call_operand.hbm [shape: f32[1,1024], index: 2, kind: input, shape index: {}]   ;;  %s3852_s3 = inlined_call_operand.hbm [shape: f32[1,1024], index: 3, kind: input, shape index: {}]   ;;  %s3853_s4 = inlined_call_operand.hbm [shape: f32[256,512], index: 4, kind: input, shape index: {}]   ;;  %s3854_s5 = inlined_call_operand.hbm [shape: f32[1,512], index: 5, kind: input, shape index: {}]   ;;  %s3855_s6 = inlined_call_operand.hbm [shape: f32[1,512], index: 6, kind: input, shape index: {}]   ;;  %s3856_s7 = inlined_call_operand.vmem [shape: f32[128,256], index: 7, kind: input, shape index: {}]   ;;  %s3857_s8 = inlined_call_operand.hbm [shape: f32[1,256], index: 8, kind: input, shape index: {}]   ;;  %s3858_s9 = inlined_call_operand.hbm [shape: f32[1,256], index: 9, kind: input, shape index: {}]   ;;  %s3859_s10 = inlined_call_operand.hbm [shape: f32[64,64], index: 10, kind: input, shape index: {}]   ;;  %s3860_s11 = inlined_call_operand.vmem [shape: f32[1,64], index: 11, kind: input, shape index: {}]   ;;  %s3861_s12 = inlined_call_operand.vmem [shape: f32[1,64], index: 12, kind: input, shape index: {}]   ;;  %s3862_s13 = inlined_call_operand.vmem [shape: f32[64,32], index: 13, kind: input, shape index: {}]   ;;  %s3863_s14 = inlined_call_operand.vmem [shape: f32[1,32], index: 14, kind: input, shape index: {}]   ;;  %s3864_s15 = inlined_call_operand.vmem [shape: f32[1,32], index: 15, kind: input, shape index: {}]   ;;  %s3865_s16 = inlined_call_operand.hbm [shape: f32[32,128], index: 16, kind: input, shape index: {}]   ;;  %s3866_s17 = inlined_call_operand.hbm [shape: f32[1,128], index: 17, kind: input, shape index: {}]   ;;  %s3867_s18 = inlined_call_operand.hbm [shape: f32[16,128], index: 18, kind: output, shape index: {}]  }
   0x1   :  { %3885 = sst [smem:[#allocation35_spill]] %s3849_s0 }
   0x2   :  { %3886 = sst [smem:[#allocation36_spill]] %s3850_s1 }
   0x3   :  { %3887 = sst [smem:[#allocation37_spill]] %s3851_s2 }
   0x4   :  { %3888 = sst [smem:[#allocation38_spill]] %s3853_s4 }
   0x5   :  { %3889 = sst [smem:[#allocation39_spill]] %s3855_s6 }
   0x6   :  { %3890 = sst [smem:[#allocation40_spill]] %s3863_s14 }
   0x7   :  { %3891 = sst [smem:[#allocation41_spill]] %s3864_s15 }
   0x8   :  { %3892 = sst [smem:[#allocation42_spill]] %s3867_s18 }
   0x9   :  { %23 = vsyncpa [#allocation3], 0 }
   0xa   :  { %24 = vsyncpa [#allocation6], 0 }
   0xb   :  { %25 = vsyncpa [#allocation9], 0 }
   0xc   :  { %26 = vsyncpa [#allocation12], 0 }
   0xd   :  { %27 = vsyncpa [#allocation15], 0 }
   0xe   :  { %28 = vsyncpa [#allocation18], 0 }
   0xf   :  { %29 = vsyncpa [#allocation4], 0 }
  0x10   :  { %31 = vsyncpa [#allocation4 + $0x1], 0  ;;  %s3278_s27 = smov 0   ;;  %s3280_s28 = smov 0  }
  0x11   :  { %s3282_s29 = smov 0   ;;  %s3284_s30 = smov 0  }
  0x12 LB: > { %3893 = sst [smem:[#allocation28_spill]] %s3147_s27  ;;  %s3299_s0 = sadd.s32 4294967295, %s3159_s30   ;;  %s3159_s30 = sphi %s3284_s30, %s3936_s30   ;;  %s3155_s29 = sphi %s3282_s29, %s3938_s29   ;;  %s3151_s28 = sphi %s3280_s28, %s3940_s28   ;;  %s3147_s27 = sphi %s3278_s27, %s3939_s27  }
  0x13   : > { %3894 = sst [smem:[#allocation29_spill]] %s3155_s29  ;;  %s2175_s19 = sadd.s32 4294967294, %s3159_s30  }
  0x14   : > { %3895 = sst [smem:[#allocation30_spill]] %s3159_s30  ;;  %s3303_s1 = sadd.s32 1, %s3159_s30  }
  0x15   : > { %3896 = sst [smem:[#allocation31_spill]] %s3303_s1  ;;  %s427_s20 = sadd.s32 1, %s3155_s29 }
  0x16   : > { %s424_s21 = ssub.s32 %s3159_s30, %s3303_s1  ;;  %p437_p0 = scmp.ne.s32.totalorder %s3155_s29, %s3151_s28 }
  0x17   : > { %p425_p1 = scmp.eq.s32.totalorder %s424_s21, 0  ;;  %p438_p2 = scmp.eq.s32.totalorder %s3299_s0, 1 }
  0x18   : > { %p443_p3 = scmp.ne.s32.totalorder %s3151_s28, %s3147_s27  ;;  %p444_p4 = scmp.eq.s32.totalorder %s2175_s19, 1 }
  0x19   : > { %s3314_s22 = scalar_select %p425_p1, %s3155_s29, %s427_s20  }
  0x1a   : > { %p3316_p5 = por %p438_p2, %p437_p0  ;;  %p3320_p6 = por %p444_p4, %p443_p3 }
  0x1b   : > { %3897 = sst [smem:[#allocation32_spill]] %s3314_s22  ;;  %p2176_p7 = scmp.ge.s32.totalorder %s3159_s30, 1 }
  0x1c   : > { %s3898_s2 = scalar_select %p3316_p5, 1, 0 }
  0x1d   : > { %s3900_s23 = scalar_select %p3320_p6, 1, 0 }
  0x1e   : > { %3899 = sst [smem:[#allocation33_spill]] %s3898_s2  ;;  %p451_p8 = scmp.lt.s32.totalorder %s3159_s30, 3 }
  0x1f   : > { %3901 = sst [smem:[#allocation34_spill]] %s3900_s23  ;;  %p3879_p9 = scmp.eq.s32.totalorder %s3299_s0, 0 }
  0x20   : > { %p3327_p10 = pnand %p2176_p7, %p451_p8  ;;  %s3161_s25 = smov [#allocation5]  }
  0x21   : > { %s477_s26 = sshll.u32 %s3161_s25, 4  ;;  %s3162_s19 = smov [#allocation8]   ;;  %s478_s26 = int_to_ptr.vmem [resolvable:$true] %s477_s26 }
  0x22   : > { %s3902_s24 = scalar_select %p3327_p10, 1, 0 }
  0x23   : > { %p2651_p11 = pneg %p3327_p10  ;;  %s498_s20 = sshll.u32 %s3162_s19, 4  ;;  %s3339_s20 = int_to_ptr.vmem [resolvable:$true] %s498_s20 }
  0x24   : > { %s3163_s22 = smov [#allocation11]   ;;  %s3904_s27 = sld [smem:[#allocation37_spill]] }
  0x25   : > { %p3335_p12 = pnand %p3879_p9, %p2651_p11  ;;  %s3341_s29 = sshll.u32 %s3163_s22, 4  ;;  %s524_s29 = int_to_ptr.vmem [resolvable:$true] %s3341_s29 }
  0x27   : > { %p3351_p0 = pneg %p3335_p12 }
  0x2a   : > { %s3905_s18 = smov %s3904_s27  ;;  %s2765_s25 = scalar_lea.hbm %s3904_s27, 128 }
  0x2b   : > { %p2766_p13 = scmp.ne.s32.totalorder %s3905_s18, %s2765_s25  ;;  %p2772_p3 = scmp.lt.u32.totalorder %s2765_s25, %s3905_s18 }
  0x2d   : > { %p2768_p1 = pnand %p3351_p0, %p2766_p13 }
  0x2f   : > { %p2769_p2 = pneg %p2768_p1 }
  0x31   : > { %p2774_p4 = pnand %p2772_p3, %p2769_p2 }
  0x33   : > { %2777 = shalt.err (!%p2774_p4)
}
  0x34   : > { %s2778_s27 = scalar_lea.vmem %s478_s26, 128  ;;  %p2786_p9 = scmp.lt.s32.totalorder %s478_s26, %s478_s26 }
  0x35   : > { %p2779_p7 = scmp.ne.s32.totalorder %s478_s26, %s2778_s27  ;;  %p2787_p6 = scmp.lt.s32.totalorder %s2778_s27, %s2778_s27 }
  0x37   : > { %p2781_p8 = pnand %p2779_p7, %p3351_p0  ;;  %p2788_p5 = por %p2787_p6, %p2786_p9 }
  0x39   : > { %p2782_p11 = pneg %p2781_p8 }
  0x3b   : > { %p2789_p10 = pnand %p2788_p5, %p2782_p11 }
  0x3d   : > { %2792 = shalt.err (!%p2789_p10)
}
  0x3e   : > { %2657 = dma.hbm_to_vmem [thread:$0]  (!%p3335_p12), %s3905_s18, 128, %s478_s26, [#allocation6]  }
  0x3f   : > { %s3907_s4 = sld [smem:[#allocation38_spill]] }
  0x45   : > { %s2793_s23 = scalar_lea.hbm %s3907_s4, 16384 }
  0x46   : > { %p2794_p13 = scmp.ne.s32.totalorder %s3907_s4, %s2793_s23  ;;  %p2800_p5 = scmp.lt.u32.totalorder %s2793_s23, %s3907_s4 }
  0x48   : > { %p2796_p1 = pnand %p2794_p13, %p3351_p0 }
  0x4a   : > { %p2797_p6 = pneg %p2796_p1 }
  0x4c   : > { %p2802_p9 = pnand %p2800_p5, %p2797_p6 }
  0x4e   : > { %2805 = shalt.err (!%p2802_p9)
}
  0x4f   : > { %s2806_s26 = scalar_lea.vmem %s3339_s20, 16384  ;;  %p2814_p4 = scmp.lt.s32.totalorder %s3339_s20, %s3339_s20 }
  0x50   : > { %p2807_p10 = scmp.ne.s32.totalorder %s3339_s20, %s2806_s26  ;;  %p2815_p7 = scmp.lt.s32.totalorder %s2806_s26, %s2806_s26 }
  0x52   : > { %p2809_p2 = pnand %p2807_p10, %p3351_p0  ;;  %p2816_p8 = por %p2815_p7, %p2814_p4 }
  0x54   : > { %p2810_p3 = pneg %p2809_p2 }
  0x56   : > { %p2817_p11 = pnand %p2816_p8, %p2810_p3 }
  0x58   : > { %2820 = shalt.err (!%p2817_p11)
}
  0x59   : > { %s3164_s30 = smov 512   ;;  %s3165_s14 = smov 32  }
  0x5a   : > { %2663 = dma.hbm_to_vmem [thread:$0]  (!%p3335_p12), %s3907_s4, 16384, %s3339_s20, [#allocation9], %s3164_s30, %s3164_s30, %s3165_s14  }
  0x5b   : > { %s3908_s6 = sld [smem:[#allocation39_spill]] }
  0x61   : > { %s2821_s25 = scalar_lea.hbm %s3908_s6, 64 }
  0x62   : > { %p2822_p13 = scmp.ne.s32.totalorder %s3908_s6, %s2821_s25  ;;  %p2828_p5 = scmp.lt.u32.totalorder %s2821_s25, %s3908_s6 }
  0x64   : > { %p2824_p1 = pnand %p2822_p13, %p3351_p0 }
  0x66   : > { %p2825_p6 = pneg %p2824_p1 }
  0x68   : > { %p2830_p9 = pnand %p2828_p5, %p2825_p6 }
  0x6a   : > { %2833 = shalt.err (!%p2830_p9)
}
  0x6b   : > { %s2834_s1 = scalar_lea.vmem %s524_s29, 64  ;;  %p2842_p4 = scmp.lt.s32.totalorder %s524_s29, %s524_s29 }
  0x6c   : > { %p2835_p10 = scmp.ne.s32.totalorder %s524_s29, %s2834_s1  ;;  %p2843_p7 = scmp.lt.s32.totalorder %s2834_s1, %s2834_s1 }
  0x6e   : > { %p2837_p2 = pnand %p2835_p10, %p3351_p0  ;;  %p2844_p8 = por %p2843_p7, %p2842_p4 }
  0x70   : > { %p2838_p3 = pneg %p2837_p2 }
  0x72   : > { %p2845_p11 = pnand %p2844_p8, %p2838_p3 }
  0x74   : > { %2848 = shalt.err (!%p2845_p11)
}
  0x75   : > { %2669 = dma.hbm_to_vmem [thread:$0]  (!%p3335_p12), %s3908_s6, 64, %s524_s29, [#allocation12]  }
  0x76   : > { %s3166_s18 = smov [#allocation14]   ;;  %s2849_s23 = scalar_lea.hbm %s3858_s9, 32 }
  0x77   : > { %s548_s14 = sshll.u32 %s3166_s18, 4  ;;  %p2850_p13 = scmp.ne.s32.totalorder %s3858_s9, %s2849_s23  ;;  %s549_s14 = int_to_ptr.vmem [resolvable:$true] %s548_s14 }
  0x78   : > { %p2856_p5 = scmp.lt.u32.totalorder %s2849_s23, %s3858_s9 }
  0x79   : > { %p2852_p1 = pnand %p2850_p13, %p3351_p0 }
  0x7b   : > { %p2853_p6 = pneg %p2852_p1 }
  0x7d   : > { %p2858_p9 = pnand %p2856_p5, %p2853_p6 }
  0x7f   : > { %2861 = shalt.err (!%p2858_p9)
}
  0x80   : > { %s2862_s29 = scalar_lea.vmem %s549_s14, 32  ;;  %p2870_p4 = scmp.lt.s32.totalorder %s549_s14, %s549_s14 }
  0x81   : > { %p2863_p10 = scmp.ne.s32.totalorder %s549_s14, %s2862_s29  ;;  %p2871_p7 = scmp.lt.s32.totalorder %s2862_s29, %s2862_s29 }
  0x83   : > { %p2865_p2 = pnand %p2863_p10, %p3351_p0  ;;  %p2872_p8 = por %p2871_p7, %p2870_p4 }
  0x85   : > { %p2866_p3 = pneg %p2865_p2 }
  0x87   : > { %p2873_p11 = pnand %p2872_p8, %p2866_p3 }
  0x89   : > { %2876 = shalt.err (!%p2873_p11)
}
  0x8a   : > { %2675 = dma.hbm_to_vmem [thread:$0]  (!%p3335_p12), %s3858_s9, 32, %s549_s14, [#allocation15]  }
  0x8b   : > { %s3167_s30 = smov [#allocation17]   ;;  %s3168_s15 = smov [#allocation2]  }
  0x8c   : > { %s586_s18 = sshll.u32 %s3167_s30, 4  ;;  %s463_s2 = sshll.u32 %s3168_s15, 4  ;;  %s587_s18 = int_to_ptr.vmem [resolvable:$true] %s586_s18  ;;  %s3427_s2 = int_to_ptr.vmem [resolvable:$true] %s463_s2 }
  0x8d   : > { %s2877_s22 = scalar_lea.hbm %s3865_s16, 512 }
  0x8e   : > { %p2878_p13 = scmp.ne.s32.totalorder %s3865_s16, %s2877_s22  ;;  %p2884_p5 = scmp.lt.u32.totalorder %s2877_s22, %s3865_s16 }
  0x90   : > { %p2880_p1 = pnand %p2878_p13, %p3351_p0 }
  0x92   : > { %p2881_p6 = pneg %p2880_p1 }
  0x94   : > { %p2886_p9 = pnand %p2884_p5, %p2881_p6 }
  0x96   : > { %2889 = shalt.err (!%p2886_p9)
}
  0x97   : > { %s2890_s1 = scalar_lea.vmem %s587_s18, 512  ;;  %p2898_p4 = scmp.lt.s32.totalorder %s587_s18, %s587_s18 }
  0x98   : > { %p2891_p10 = scmp.ne.s32.totalorder %s587_s18, %s2890_s1  ;;  %p2899_p7 = scmp.lt.s32.totalorder %s2890_s1, %s2890_s1 }
  0x9a   : > { %p2893_p2 = pnand %p2891_p10, %p3351_p0  ;;  %p2900_p8 = por %p2899_p7, %p2898_p4 }
  0x9c   : > { %p2894_p3 = pneg %p2893_p2 }
  0x9e   : > { %p2901_p11 = pnand %p2900_p8, %p2894_p3 }
  0xa0   : > { %2904 = shalt.err (!%p2901_p11)
}
  0xa1   : > { %s3883_s20 = smov 128   ;;  %s3884_s30 = smov 8  }
  0xa2   : > { %2681 = dma.hbm_to_vmem [thread:$0]  (!%p3335_p12), %s3865_s16, 512, %s587_s18, [#allocation18], %s3883_s20, %s3883_s20, %s3884_s30  }
  0xa3   : > { %s3909_s27 = sld [smem:[#allocation36_spill]] }
  0xa9   : > { %s3910_s26 = smov %s3909_s27  ;;  %s2905_s29 = scalar_lea.hbm %s3909_s27, 16384 }
  0xaa   : > { %p2906_p13 = scmp.ne.s32.totalorder %s3910_s26, %s2905_s29  ;;  %p2912_p5 = scmp.lt.u32.totalorder %s2905_s29, %s3910_s26 }
  0xac   : > { %p2908_p1 = pnand %p2906_p13, %p3351_p0 }
  0xae   : > { %p2909_p6 = pneg %p2908_p1 }
  0xb0   : > { %p2914_p9 = pnand %p2912_p5, %p2909_p6 }
  0xb2   : > { %2917 = shalt.err (!%p2914_p9)
}
  0xb3   : > { %s2918_s18 = scalar_lea.vmem %s3427_s2, 16384  ;;  %p2926_p4 = scmp.lt.s32.totalorder %s3427_s2, %s3427_s2 }
  0xb4   : > { %p2919_p10 = scmp.ne.s32.totalorder %s3427_s2, %s2918_s18  ;;  %p2927_p7 = scmp.lt.s32.totalorder %s2918_s18, %s2918_s18 }
  0xb6   : > { %p2921_p2 = pnand %p2919_p10, %p3351_p0  ;;  %p2928_p8 = por %p2927_p7, %p2926_p4 }
  0xb8   : > { %p2922_p3 = pneg %p2921_p2 }
  0xba   : > { %p2929_p11 = pnand %p2928_p8, %p2922_p3 }
  0xbc   : > { %2932 = shalt.err (!%p2929_p11)
}
  0xbd   : > { %s3171_s15 = smov 1024   ;;  %s3172_s4 = smov 64  }
  0xbe   : > { %2654 = dma.hbm_to_vmem [thread:$0]  (!%p3335_p12), %s3910_s26, 16384, %s3427_s2, [#allocation3], %s3171_s15, %s3171_s15, %s3172_s4  }
  0xbf   : > { %s3173_s25 = smov [#allocation7]   ;;  %s3174_s27 = smov [#allocation10]  }
  0xc0   : > { %s488_s22 = sshll.u32 %s3173_s25, 4  ;;  %s512_s29 = sshll.u32 %s3174_s27, 4  ;;  %s489_s22 = int_to_ptr.vmem [resolvable:$true] %s488_s22  ;;  %s3473_s29 = int_to_ptr.vmem [resolvable:$true] %s512_s29 }
  0xc1   : > { %s2933_s18 = scalar_lea.hbm %s3852_s3, 128 }
  0xc2   : > { %p2934_p13 = scmp.ne.s32.totalorder %s3852_s3, %s2933_s18  ;;  %p2940_p5 = scmp.lt.u32.totalorder %s2933_s18, %s3852_s3 }
  0xc4   : > { %p2936_p1 = pnand %p2934_p13, %p3351_p0 }
  0xc6   : > { %p2937_p6 = pneg %p2936_p1 }
  0xc8   : > { %p2942_p9 = pnand %p2940_p5, %p2937_p6 }
  0xca   : > { %2945 = shalt.err (!%p2942_p9)
}
  0xcb   : > { %s2946_s15 = scalar_lea.vmem %s489_s22, 128  ;;  %p2954_p4 = scmp.lt.s32.totalorder %s489_s22, %s489_s22 }
  0xcc   : > { %p2947_p10 = scmp.ne.s32.totalorder %s489_s22, %s2946_s15  ;;  %p2955_p7 = scmp.lt.s32.totalorder %s2946_s15, %s2946_s15 }
  0xce   : > { %p2949_p2 = pnand %p2947_p10, %p3351_p0  ;;  %p2956_p8 = por %p2955_p7, %p2954_p4 }
  0xd0   : > { %p2950_p3 = pneg %p2949_p2 }
  0xd2   : > { %p2957_p11 = pnand %p2956_p8, %p2950_p3 }
  0xd4   : > { %2960 = shalt.err (!%p2957_p11)
}
  0xd5   : > { %2660 = dma.hbm_to_vmem [thread:$0]  (!%p3335_p12), %s3852_s3, 128, %s489_s22, [#allocation6]  }
  0xd6   : > { %s2961_s25 = scalar_lea.hbm %s3854_s5, 64 }
  0xd7   : > { %p2962_p13 = scmp.ne.s32.totalorder %s3854_s5, %s2961_s25  ;;  %p2968_p5 = scmp.lt.u32.totalorder %s2961_s25, %s3854_s5 }
  0xd9   : > { %p2964_p1 = pnand %p2962_p13, %p3351_p0 }
  0xdb   : > { %p2965_p6 = pneg %p2964_p1 }
  0xdd   : > { %p2970_p9 = pnand %p2968_p5, %p2965_p6 }
  0xdf   : > { %2973 = shalt.err (!%p2970_p9)
}
  0xe0   : > { %s2974_s22 = scalar_lea.vmem %s3473_s29, 64  ;;  %p2982_p4 = scmp.lt.s32.totalorder %s3473_s29, %s3473_s29 }
  0xe1   : > { %p2975_p10 = scmp.ne.s32.totalorder %s3473_s29, %s2974_s22  ;;  %p2983_p7 = scmp.lt.s32.totalorder %s2974_s22, %s2974_s22 }
  0xe3   : > { %p2977_p2 = pnand %p2975_p10, %p3351_p0  ;;  %p2984_p8 = por %p2983_p7, %p2982_p4 }
  0xe5   : > { %p2978_p3 = pneg %p2977_p2 }
  0xe7   : > { %p2985_p11 = pnand %p2984_p8, %p2978_p3 }
  0xe9   : > { %2988 = shalt.err (!%p2985_p11)
}
  0xea   : > { %2666 = dma.hbm_to_vmem [thread:$0]  (!%p3335_p12), %s3854_s5, 64, %s3473_s29, [#allocation9]  }
  0xeb   : > { %s3175_s15 = smov [#allocation13]   ;;  %s3176_s30 = smov [#allocation16]  }
  0xec   : > { %s537_s20 = sshll.u32 %s3175_s15, 4  ;;  %s558_s4 = sshll.u32 %s3176_s30, 4  ;;  %s538_s20 = int_to_ptr.vmem [resolvable:$true] %s537_s20  ;;  %s3516_s4 = int_to_ptr.vmem [resolvable:$true] %s558_s4 }
  0xed   : > { %s2989_s27 = scalar_lea.hbm %s3857_s8, 32 }
  0xee   : > { %p2990_p13 = scmp.ne.s32.totalorder %s3857_s8, %s2989_s27  ;;  %p2996_p5 = scmp.lt.u32.totalorder %s2989_s27, %s3857_s8 }
  0xf0   : > { %p2992_p1 = pnand %p2990_p13, %p3351_p0 }
  0xf2   : > { %p2993_p6 = pneg %p2992_p1 }
  0xf4   : > { %p2998_p9 = pnand %p2996_p5, %p2993_p6 }
  0xf6   : > { %3001 = shalt.err (!%p2998_p9)
}
  0xf7   : > { %s3002_s22 = scalar_lea.vmem %s538_s20, 32  ;;  %p3010_p4 = scmp.lt.s32.totalorder %s538_s20, %s538_s20 }
  0xf8   : > { %p3003_p10 = scmp.ne.s32.totalorder %s538_s20, %s3002_s22  ;;  %p3011_p7 = scmp.lt.s32.totalorder %s3002_s22, %s3002_s22 }
  0xfa   : > { %p3005_p2 = pnand %p3003_p10, %p3351_p0  ;;  %p3012_p8 = por %p3011_p7, %p3010_p4 }
  0xfc   : > { %p3006_p3 = pneg %p3005_p2 }
  0xfe   : > { %p3013_p11 = pnand %p3012_p8, %p3006_p3 }
 0x100   : > { %3016 = shalt.err (!%p3013_p11)
}
 0x101   : > { %2672 = dma.hbm_to_vmem [thread:$0]  (!%p3335_p12), %s3857_s8, 32, %s538_s20, [#allocation12]  }
 0x102   : > { %s3017_s23 = scalar_lea.hbm %s3859_s10, 1024 }
 0x103   : > { %p3018_p13 = scmp.ne.s32.totalorder %s3859_s10, %s3017_s23  ;;  %p3024_p5 = scmp.lt.u32.totalorder %s3017_s23, %s3859_s10 }
 0x105   : > { %p3020_p1 = pnand %p3018_p13, %p3351_p0 }
 0x107   : > { %p3021_p6 = pneg %p3020_p1 }
 0x109   : > { %p3026_p9 = pnand %p3024_p5, %p3021_p6 }
 0x10b   : > { %3029 = shalt.err (!%p3026_p9)
}
 0x10c   : > { %s3030_s20 = scalar_lea.vmem %s3516_s4, 1024  ;;  %p3038_p4 = scmp.lt.s32.totalorder %s3516_s4, %s3516_s4 }
 0x10d   : > { %p3031_p10 = scmp.ne.s32.totalorder %s3516_s4, %s3030_s20  ;;  %p3039_p7 = scmp.lt.s32.totalorder %s3030_s20, %s3030_s20 }
 0x10f   : > { %p3033_p2 = pnand %p3031_p10, %p3351_p0  ;;  %p3040_p8 = por %p3039_p7, %p3038_p4 }
 0x111   : > { %p3034_p3 = pneg %p3033_p2 }
 0x113   : > { %p3041_p11 = pnand %p3040_p8, %p3034_p3 }
 0x115   : > { %3044 = shalt.err (!%p3041_p11)
}
 0x116   : > { %s3911_s18 = smov 8   ;;  %s3912_s29 = smov 128  }
 0x117   : > { %2678 = dma.hbm_to_vmem [thread:$0]  (!%p3335_p12), %s3859_s10, 1024, %s3516_s4, [#allocation15], %s3912_s29, %s3912_s29, %s3911_s18  }
 0x118   : > { %s3177_s2 = smov [#allocation19]   ;;  %s3045_s25 = scalar_lea.hbm %s3866_s17, 16 }
 0x119   : > { %s600_s15 = sshll.u32 %s3177_s2, 4  ;;  %p3046_p13 = scmp.ne.s32.totalorder %s3866_s17, %s3045_s25  ;;  %s601_s15 = int_to_ptr.vmem [resolvable:$true] %s600_s15 }
 0x11a   : > { %p3052_p5 = scmp.lt.u32.totalorder %s3045_s25, %s3866_s17 }
 0x11b   : > { %p3048_p1 = pnand %p3046_p13, %p3351_p0 }
 0x11d   : > { %p3049_p6 = pneg %p3048_p1 }
 0x11f   : > { %p3054_p9 = pnand %p3052_p5, %p3049_p6 }
 0x121   : > { %3057 = shalt.err (!%p3054_p9)
}
 0x122   : > { %s3058_s4 = scalar_lea.vmem %s601_s15, 16  ;;  %s3065_s18 = scalar_lea.vmem %s601_s15, 32 }
 0x123   : > { %p3059_p10 = scmp.ne.s32.totalorder %s601_s15, %s3058_s4  ;;  %p3066_p4 = scmp.lt.s32.totalorder %s601_s15, %s601_s15 }
 0x124   : > { %p3067_p7 = scmp.lt.s32.totalorder %s3065_s18, %s3058_s4 }
 0x125   : > { %p3061_p2 = pnand %p3059_p10, %p3351_p0 }
 0x126   : > { %p3068_p8 = por %p3067_p7, %p3066_p4 }
 0x127   : > { %p3062_p3 = pneg %p3061_p2 }
 0x129   : > { %p3069_p11 = pnand %p3068_p8, %p3062_p3 }
 0x12b   : > { %3072 = shalt.err (!%p3069_p11)
}
 0x12c   : > { %2684 = dma.hbm_to_vmem [thread:$0]  (!%p3335_p12), %s3866_s17, 16, %s601_s15, [#allocation18]  }
 0x12d   : > { %p3913_p13 = scmp.ne.s32.totalorder %s3902_s24, 0 }
 0x12e   : > { %p3914_p1 = scmp.eq.s32.totalorder (!%p3913_p13), %s3299_s0, 0 }
 0x12f   : > { %620 = sbr.rel (%p3913_p13) target bundleno = 1845 (0x735), region = 92 }
 0x136   : > { %3118 = dma.done.wait (%p3914_p1), [#allocation3], 16384   ;;  %p3915_p0 = pmov %p3914_p1 }
 0x138   : > { %3120 = vsyncadd (%p3915_p0), [#allocation3], 4294950912  ;;  %p3916_p6 = pmov %p3915_p0 }
 0x139   : > { %p3917_p5 = pmov %p3915_p0 }
 0x13a   : > { %3122 = dma.done.wait (%p3916_p6), [#allocation6], 256  }
 0x13b   : > { %3124 = vsyncadd (%p3917_p5), [#allocation6], 4294967040  ;;  %p3918_p9 = pmov %p3915_p0 }
 0x13c   : > { %p3919_p12 = pmov %p3915_p0 }
 0x13d   : > { %3126 = dma.done.wait (%p3918_p9), [#allocation9], 16448  }
 0x13e   : > { %3128 = vsyncadd (%p3919_p12), [#allocation9], 4294950848  ;;  %p3920_p10 = pmov %p3915_p0 }
 0x13f   : > { %p3921_p2 = pmov %p3915_p0 }
 0x140   : > { %3130 = dma.done.wait (%p3920_p10), [#allocation12], 96  }
 0x141   : > { %3132 = vsyncadd (%p3921_p2), [#allocation12], 4294967200  ;;  %p3922_p3 = pmov %p3915_p0 }
 0x142   : > { %p3923_p4 = pmov %p3915_p0 }
 0x143   : > { %3134 = dma.done.wait (%p3922_p3), [#allocation15], 1056  }
 0x144   : > { %3136 = vsyncadd (%p3923_p4), [#allocation15], 4294966240  ;;  %p3924_p7 = pmov %p3915_p0 }
 0x145   : > { %p3925_p8 = pmov %p3915_p0 }
 0x146   : > { %3138 = dma.done.wait (%p3924_p7), [#allocation18], 528  }
 0x147   : > { %3140 = vsyncadd (%p3925_p8), [#allocation18], 4294966768  ;;  %v3178_v0 = vmov 0.0   ;;  %v719_v1 = vld [vmem:[#allocation2 + $0x8] sm:$0xff]  ;;  %v721_v3 = vld [vmem:[#allocation2 + $0x18] sm:$0xff]  ;;  %p713_p11 = scmp.lt.s32.totalorder %s3299_s0, 1 }
 0x148   : > { %910 = vmatprep.mubr.f32.mxu0 %v3178_v0  ;;  %981 = vmatprep.mubr.f32.mxu1 %v3178_v0  ;;  %v727_v2 = vld [vmem:[#allocation2 + $0x48] sm:$0xff]  ;;  %v729_v5 = vld [vmem:[#allocation2 + $0x58] sm:$0xff]  ;;  %v718_v6 = vld [vmem:[#allocation2] sm:$0xff]  ;;  %s3926_s2 = sld [smem:[#allocation35_spill]]  ;;  %vm3180_vm0 = vmmov 0   ;;  %s3181_s19 = smov 64  }
 0x149   : > { %v2287_v4 = vpack.c.bf16 %v727_v2, %v719_v1  ;;  %v726_v7 = vld [vmem:[#allocation2 + $0x40] sm:$0xff]  ;;  %v2319_v8 = vpack.c.bf16 %v729_v5, %v721_v3  ;;  %v720_v10 = vld [vmem:[#allocation2 + $0x10] sm:$0xff]  ;;  %v735_v12 = vld [vmem:[#allocation2 + $0x88] sm:$0xff]  ;;  %s714_s24 = scalar_select %p713_p11, %s3299_s0, 1  ;;  %vm1720_vm1 = vcmask 523264   ;;  %vm1920_vm2 = vcmask 261120  }
 0x14a   : > { %v2289_v9 = vpack.c.bf16 %v726_v7, %v718_v6  ;;  %v728_v11 = vld [vmem:[#allocation2 + $0x50] sm:$0xff]  ;;  %v743_v14 = vld [vmem:[#allocation2 + $0xc8] sm:$0xff]  ;;  %v737_v15 = vld [vmem:[#allocation2 + $0x98] sm:$0xff]  ;;  %s3927_s25 = sld [smem:[#allocation40_spill]]  ;;  %s3928_s1 = sld [smem:[#allocation41_spill]] }
 0x14b   : > { %2288 = vmatprep.subr.bf16.mxu0 %v2287_v4  ;;  %v2321_v13 = vpack.c.bf16 %v728_v11, %v720_v10  ;;  %v745_v16 = vld [vmem:[#allocation2 + $0xd8] sm:$0xff]  ;;  %2320 = vmatprep.subr.bf16.mxu1 %v2319_v8  ;;  %v2291_v17 = vpack.c.bf16 %v743_v14, %v735_v12  ;;  %v734_v19 = vld [vmem:[#allocation2 + $0x80] sm:$0xff]  ;;  %v736_v21 = vld [vmem:[#allocation2 + $0x90] sm:$0xff]  ;;  %s2202_s21 = sshll.u32 %s714_s24, 3  ;;  %s3929_s20 = sld [smem:[#allocation33_spill]] }
 0x14c   : > { %2290 = vmatpush1.bf16.msra.mxu0 %v2289_v9  ;;  %v2323_v18 = vpack.c.bf16 %v745_v16, %v737_v15  ;;  %v742_v20 = vld [vmem:[#allocation2 + $0xc0] sm:$0xff]  ;;  %v744_v23 = vld [vmem:[#allocation2 + $0xd0] sm:$0xff]  ;;  %v751_v24 = vld [vmem:[#allocation2 + $0x108] sm:$0xff]  ;;  %s710_s4 = sand.u32 1, %s3151_s28   ;;  %s2212_s29 = sshll.u32 %s3299_s0, 7 }
 0x14d   : > { %2322 = vmatpush1.bf16.msra.mxu1 %v2321_v13  ;;  %v2293_v22 = vpack.c.bf16 %v742_v20, %v734_v19  ;;  %v759_v25 = vld [vmem:[#allocation2 + $0x148] sm:$0xff]  ;;  %2292 = vmatprep.subr.bf16.mxu0 %v2291_v17  ;;  %v2325_v26 = vpack.c.bf16 %v744_v23, %v736_v21  ;;  %v753_v28 = vld [vmem:[#allocation2 + $0x118] sm:$0xff]  ;;  %v750_v30 = vld [vmem:[#allocation2 + $0x100] sm:$0xff]  ;;  %s2201_s18 = sshll.u32 %s710_s4, 3  ;;  %s3930_s6 = sld [smem:[#allocation42_spill]] }
 0x14e   : > { %2324 = vmatprep.subr.bf16.mxu1 %v2323_v18  ;;  %v2295_v27 = vpack.c.bf16 %v759_v25, %v751_v24  ;;  %v761_v29 = vld [vmem:[#allocation2 + $0x158] sm:$0xff]  ;;  %v758_v32 = vld [vmem:[#allocation2 + $0x140] sm:$0xff]  ;;  %v752_v33 = vld [vmem:[#allocation2 + $0x110] sm:$0xff]  ;;  %s716_s15 = scalar_lea.vmem %s3926_s2, %s2202_s21  ;;  %s712_s22 = scalar_lea.vmem [#allocation20], %s2201_s18 }
 0x14f   : > { %v2327_v31 = vpack.c.bf16 %v761_v29, %v753_v28  ;;  %v760_v34 = vld [vmem:[#allocation2 + $0x150] sm:$0xff]  ;;  %v2297_v35 = vpack.c.bf16 %v758_v32, %v750_v30  ;;  %v767_v36 = vld [vmem:[#allocation2 + $0x188] sm:$0xff]  ;;  %v769_v38 = vld [vmem:[#allocation2 + $0x198] sm:$0xff]  ;;  %s2009_s24 = sshll.u32 %s712_s22, 4  ;;  %s3182_s0 = smov [#allocation20]   ;;  %s3809_s24 = int_to_ptr.vmem [resolvable:$true] %s2009_s24 }
 0x150   : > { %2294 = vmatpush1.bf16.msra.mxu0 %v2293_v22  ;;  %v775_v37 = vld [vmem:[#allocation2 + $0x1c8] sm:$0xff]  ;;  %v2329_v39 = vpack.c.bf16 %v760_v34, %v752_v33  ;;  %v777_v41 = vld [vmem:[#allocation2 + $0x1d8] sm:$0xff]  ;;  %v766_v42 = vld [vmem:[#allocation2 + $0x180] sm:$0xff]  ;;  %s3073_s30 = scalar_lea.vmem %s3809_s24, 128  ;;  %s3077_s23 = sshll.u32 %s3182_s0, 4  ;;  %s3078_s23 = int_to_ptr.vmem [resolvable:$false] %s3077_s23 }
 0x151   : > { %2326 = vmatpush1.bf16.msra.mxu1 %v2325_v26  ;;  %2296 = vmatprep.subr.bf16.mxu0 %v2295_v27  ;;  %v2299_v40 = vpack.c.bf16 %v775_v37, %v767_v36  ;;  %v774_v43 = vld [vmem:[#allocation2 + $0x1c0] sm:$0xff]  ;;  %v2331_v44 = vpack.c.bf16 %v777_v41, %v769_v38  ;;  %v768_v45 = vld [vmem:[#allocation2 + $0x190] sm:$0xff]  ;;  %v783_v47 = vld [vmem:[#allocation2 + $0x208] sm:$0xff]  ;;  %p3074_p13 = scmp.ne.s32.totalorder %s3809_s24, %s3073_s30  ;;  %p3931_p1 = scmp.ne.s32.totalorder %s3929_s20, 0 }
 0x152   : > { %2328 = vmatprep.subr.bf16.mxu1 %v2327_v31  ;;  %v776_v46 = vld [vmem:[#allocation2 + $0x1d0] sm:$0xff]  ;;  %v791_v48 = vld [vmem:[#allocation2 + $0x248] sm:$0xff]  ;;  %v785_v49 = vld [vmem:[#allocation2 + $0x218] sm:$0xff]  ;;  %v2301_v51 = vpack.c.bf16 %v774_v43, %v766_v42  ;;  %p3080_p5 = scmp.lt.s32.totalorder %s3809_s24, %s3078_s23 }
 0x153   : > { %v793_v50 = vld [vmem:[#allocation2 + $0x258] sm:$0xff]  ;;  %v2333_v52 = vpack.c.bf16 %v776_v46, %v768_v45  ;;  %v2303_v53 = vpack.c.bf16 %v791_v48, %v783_v47  ;;  %v782_v54 = vld [vmem:[#allocation2 + $0x200] sm:$0xff]  ;;  %v784_v56 = vld [vmem:[#allocation2 + $0x210] sm:$0xff]  ;;  %s3807_s2 = scalar_lea.hbm %s3930_s6, %s2212_s29  ;;  %p3075_p0 = pnand %p3074_p13, %p3931_p1 }
 0x154   : > { %2298 = vmatpush1.bf16.msra.mxu0 %v2297_v35  ;;  %v790_v55 = vld [vmem:[#allocation2 + $0x240] sm:$0xff]  ;;  %v2335_v57 = vpack.c.bf16 %v793_v50, %v785_v49  ;;  %v792_v58 = vld [vmem:[#allocation2 + $0x250] sm:$0xff]  ;;  %v799_v59 = vld [vmem:[#allocation2 + $0x288] sm:$0xff] }
 0x155   : > { %2330 = vmatpush1.bf16.msra.mxu1 %v2329_v39  ;;  %2300 = vmatprep.subr.bf16.mxu0 %v2299_v40  ;;  %v807_v60 = vld [vmem:[#allocation2 + $0x2c8] sm:$0xff]  ;;  %v801_v61 = vld [vmem:[#allocation2 + $0x298] sm:$0xff]  ;;  %v2305_v63 = vpack.c.bf16 %v790_v55, %v782_v54  ;;  %v2337_v1 = vpack.c.bf16 %v792_v58, %v784_v56  ;;  %v798_v3 = vld [vmem:[#allocation2 + $0x280] sm:$0xff]  ;;  %p3076_p6 = pneg %p3075_p0 }
 0x156   : > { %2332 = vmatprep.subr.bf16.mxu1 %v2331_v44  ;;  %v809_v62 = vld [vmem:[#allocation2 + $0x2d8] sm:$0xff]  ;;  %v2307_v2 = vpack.c.bf16 %v807_v60, %v799_v59  ;;  %v806_v4 = vld [vmem:[#allocation2 + $0x2c0] sm:$0xff]  ;;  %v800_v5 = vld [vmem:[#allocation2 + $0x290] sm:$0xff] }
 0x157   : > { %v2339_v6 = vpack.c.bf16 %v809_v62, %v801_v61  ;;  %v808_v7 = vld [vmem:[#allocation2 + $0x2d0] sm:$0xff]  ;;  %v815_v8 = vld [vmem:[#allocation2 + $0x308] sm:$0xff]  ;;  %v817_v10 = vld [vmem:[#allocation2 + $0x318] sm:$0xff]  ;;  %v2309_v12 = vpack.c.bf16 %v806_v4, %v798_v3 }
 0x158   : > { %2302 = vmatpush1.bf16.msra.mxu0 %v2301_v51  ;;  %v823_v9 = vld [vmem:[#allocation2 + $0x348] sm:$0xff]  ;;  %v825_v11 = vld [vmem:[#allocation2 + $0x358] sm:$0xff]  ;;  %v2341_v13 = vpack.c.bf16 %v808_v7, %v800_v5  ;;  %v814_v15 = vld [vmem:[#allocation2 + $0x300] sm:$0xff] }
 0x159   : > { %2334 = vmatpush1.bf16.msra.mxu1 %v2333_v52  ;;  %2304 = vmatprep.subr.bf16.mxu0 %v2303_v53  ;;  %v2311_v14 = vpack.c.bf16 %v823_v9, %v815_v8  ;;  %v822_v16 = vld [vmem:[#allocation2 + $0x340] sm:$0xff]  ;;  %v816_v17 = vld [vmem:[#allocation2 + $0x310] sm:$0xff]  ;;  %v2343_v18 = vpack.c.bf16 %v825_v11, %v817_v10  ;;  %v831_v20 = vld [vmem:[#allocation2 + $0x388] sm:$0xff] }
 0x15a   : > { %2336 = vmatprep.subr.bf16.mxu1 %v2335_v57  ;;  %v824_v19 = vld [vmem:[#allocation2 + $0x350] sm:$0xff]  ;;  %v839_v21 = vld [vmem:[#allocation2 + $0x3c8] sm:$0xff]  ;;  %v833_v22 = vld [vmem:[#allocation2 + $0x398] sm:$0xff]  ;;  %v2313_v24 = vpack.c.bf16 %v822_v16, %v814_v15 }
 0x15b   : > { %v841_v23 = vld [vmem:[#allocation2 + $0x3d8] sm:$0xff]  ;;  %v2345_v25 = vpack.c.bf16 %v824_v19, %v816_v17  ;;  %v2315_v26 = vpack.c.bf16 %v839_v21, %v831_v20  ;;  %v830_v27 = vld [vmem:[#allocation2 + $0x380] sm:$0xff]  ;;  %v832_v29 = vld [vmem:[#allocation2 + $0x390] sm:$0xff] }
 0x15c   : > { %2306 = vmatpush1.bf16.msra.mxu0 %v2305_v63  ;;  %v838_v28 = vld [vmem:[#allocation2 + $0x3c0] sm:$0xff]  ;;  %v2347_v30 = vpack.c.bf16 %v841_v23, %v833_v22  ;;  %v840_v31 = vld [vmem:[#allocation2 + $0x3d0] sm:$0xff]  ;;  %v723_v32 = vld [vmem:[#allocation2 + $0x28] sm:$0xff] }
 0x15d   : > { %2338 = vmatpush1.bf16.msra.mxu1 %v2337_v1  ;;  %2308 = vmatprep.subr.bf16.mxu0 %v2307_v2  ;;  %v731_v33 = vld [vmem:[#allocation2 + $0x68] sm:$0xff]  ;;  %v725_v34 = vld [vmem:[#allocation2 + $0x38] sm:$0xff]  ;;  %v2317_v36 = vpack.c.bf16 %v838_v28, %v830_v27  ;;  %v2349_v37 = vpack.c.bf16 %v840_v31, %v832_v29  ;;  %v722_v39 = vld [vmem:[#allocation2 + $0x20] sm:$0xff] }
 0x15e   : > { %2340 = vmatprep.subr.bf16.mxu1 %v2339_v6  ;;  %v733_v35 = vld [vmem:[#allocation2 + $0x78] sm:$0xff]  ;;  %v2351_v38 = vpack.c.bf16 %v731_v33, %v723_v32  ;;  %v730_v40 = vld [vmem:[#allocation2 + $0x60] sm:$0xff]  ;;  %v724_v41 = vld [vmem:[#allocation2 + $0x30] sm:$0xff] }
 0x15f   : > { %v2383_v42 = vpack.c.bf16 %v733_v35, %v725_v34  ;;  %v732_v43 = vld [vmem:[#allocation2 + $0x70] sm:$0xff]  ;;  %v739_v44 = vld [vmem:[#allocation2 + $0xa8] sm:$0xff]  ;;  %v741_v46 = vld [vmem:[#allocation2 + $0xb8] sm:$0xff]  ;;  %v2353_v49 = vpack.c.bf16 %v730_v40, %v722_v39 }
 0x160   : > { %2310 = vmatpush1.bf16.msra.mxu0 %v2309_v12  ;;  %v747_v45 = vld [vmem:[#allocation2 + $0xe8] sm:$0xff]  ;;  %v749_v47 = vld [vmem:[#allocation2 + $0xf8] sm:$0xff]  ;;  %v3615_v48 = vld [vmem:[%s716_s15] sm:$0xff]  ;;  %v2385_v50 = vpack.c.bf16 %v732_v43, %v724_v41  ;;  %s1996_s15 = scalar_lea.sflag [#allocation4], %s710_s4 }
 0x161   : > { %2342 = vmatpush1.bf16.msra.mxu1 %v2341_v13  ;;  %2312 = vmatprep.subr.bf16.mxu0 %v2311_v14  ;;  %v2355_v51 = vpack.c.bf16 %v747_v45, %v739_v44  ;;  %v738_v52 = vld [vmem:[#allocation2 + $0xa0] sm:$0xff]  ;;  %v740_v54 = vld [vmem:[#allocation2 + $0xb0] sm:$0xff]  ;;  %v2387_v55 = vpack.c.bf16 %v749_v47, %v741_v46  ;;  %v755_v57 = vld [vmem:[#allocation2 + $0x128] sm:$0xff] }
 0x162   : > { %2344 = vmatprep.subr.bf16.mxu1 %v2343_v18  ;;  %v746_v53 = vld [vmem:[#allocation2 + $0xe0] sm:$0xff]  ;;  %v748_v56 = vld [vmem:[#allocation2 + $0xf0] sm:$0xff]  ;;  %v763_v58 = vld [vmem:[#allocation2 + $0x168] sm:$0xff] }
 0x163   : > { %v757_v59 = vld [vmem:[#allocation2 + $0x138] sm:$0xff]  ;;  %v2357_v61 = vpack.c.bf16 %v746_v53, %v738_v52  ;;  %v2389_v62 = vpack.c.bf16 %v748_v56, %v740_v54  ;;  %v2359_v63 = vpack.c.bf16 %v763_v58, %v755_v57  ;;  %v754_v1 = vld [vmem:[#allocation2 + $0x120] sm:$0xff]  ;;  %v756_v3 = vld [vmem:[#allocation2 + $0x130] sm:$0xff] }
 0x164   : > { %2314 = vmatpush1.bf16.msra.mxu0 %v2313_v24  ;;  %v765_v60 = vld [vmem:[#allocation2 + $0x178] sm:$0xff]  ;;  %v762_v2 = vld [vmem:[#allocation2 + $0x160] sm:$0xff]  ;;  %v764_v5 = vld [vmem:[#allocation2 + $0x170] sm:$0xff] }
 0x165   : > { %2346 = vmatpush1.bf16.msra.mxu1 %v2345_v25  ;;  %2316 = vmatprep.subr.bf16.mxu0 %v2315_v26  ;;  %v2391_v4 = vpack.c.bf16 %v765_v60, %v757_v59  ;;  %v771_v6 = vld [vmem:[#allocation2 + $0x1a8] sm:$0xff]  ;;  %v773_v8 = vld [vmem:[#allocation2 + $0x1b8] sm:$0xff]  ;;  %v2361_v10 = vpack.c.bf16 %v762_v2, %v754_v1  ;;  %v2393_v11 = vpack.c.bf16 %v764_v5, %v756_v3  ;;  %v770_v13 = vld [vmem:[#allocation2 + $0x1a0] sm:$0xff] }
 0x166   : > { %2348 = vmatprep.subr.bf16.mxu1 %v2347_v30  ;;  %v779_v7 = vld [vmem:[#allocation2 + $0x1e8] sm:$0xff]  ;;  %v781_v9 = vld [vmem:[#allocation2 + $0x1f8] sm:$0xff]  ;;  %v778_v14 = vld [vmem:[#allocation2 + $0x1e0] sm:$0xff] }
 0x167   : > { %v2363_v12 = vpack.c.bf16 %v779_v7, %v771_v6  ;;  %v772_v15 = vld [vmem:[#allocation2 + $0x1b0] sm:$0xff]  ;;  %v2395_v16 = vpack.c.bf16 %v781_v9, %v773_v8  ;;  %v787_v18 = vld [vmem:[#allocation2 + $0x228] sm:$0xff]  ;;  %v789_v20 = vld [vmem:[#allocation2 + $0x238] sm:$0xff]  ;;  %v2365_v22 = vpack.c.bf16 %v778_v14, %v770_v13 }
 0x168   : > { %2318 = vmatpush1.bf16.msra.mxu0 %v2317_v36  ;;  %v780_v17 = vld [vmem:[#allocation2 + $0x1f0] sm:$0xff]  ;;  %v795_v19 = vld [vmem:[#allocation2 + $0x268] sm:$0xff]  ;;  %v797_v21 = vld [vmem:[#allocation2 + $0x278] sm:$0xff] }
 0x169   : > { %2350 = vmatpush1.bf16.msra.mxu1 %v2349_v37  ;;  %2352 = vmatprep.subr.bf16.mxu0 %v2351_v38  ;;  %v2397_v23 = vpack.c.bf16 %v780_v17, %v772_v15  ;;  %v2367_v24 = vpack.c.bf16 %v795_v19, %v787_v18  ;;  %v786_v25 = vld [vmem:[#allocation2 + $0x220] sm:$0xff]  ;;  %v788_v27 = vld [vmem:[#allocation2 + $0x230] sm:$0xff]  ;;  %v2399_v28 = vpack.c.bf16 %v797_v21, %v789_v20  ;;  %v803_v30 = vld [vmem:[#allocation2 + $0x2a8] sm:$0xff] }
 0x16a   : > { %2384 = vmatprep.subr.bf16.mxu1 %v2383_v42  ;;  %v794_v26 = vld [vmem:[#allocation2 + $0x260] sm:$0xff]  ;;  %v796_v29 = vld [vmem:[#allocation2 + $0x270] sm:$0xff]  ;;  %v811_v31 = vld [vmem:[#allocation2 + $0x2e8] sm:$0xff] }
 0x16b   : > { %911 = vmatmul.mubr.f32.vlgmr.msra.gmra.mrb[0].mxu0 %v3615_v48  ;;  %v805_v32 = vld [vmem:[#allocation2 + $0x2b8] sm:$0xff]  ;;  %v2369_v34 = vpack.c.bf16 %v794_v26, %v786_v25  ;;  %v2401_v35 = vpack.c.bf16 %v796_v29, %v788_v27  ;;  %v2371_v36 = vpack.c.bf16 %v811_v31, %v803_v30  ;;  %v802_v37 = vld [vmem:[#allocation2 + $0x2a0] sm:$0xff]  ;;  %v804_v39 = vld [vmem:[#allocation2 + $0x2b0] sm:$0xff] }
 0x16c   : > { %982 = vmatmul.mubr.f32.vlgmr.msra.gmra.mrb[0].mxu1 %v3615_v48  ;;  %2354 = vmatpush1.bf16.msra.mxu0 %v2353_v49  ;;  %v813_v33 = vld [vmem:[#allocation2 + $0x2f8] sm:$0xff]  ;;  %v810_v38 = vld [vmem:[#allocation2 + $0x2e0] sm:$0xff]  ;;  %v812_v41 = vld [vmem:[#allocation2 + $0x2f0] sm:$0xff] }
 0x16d   : > { %2386 = vmatpush1.bf16.msra.mxu1 %v2385_v50  ;;  %2356 = vmatprep.subr.bf16.mxu0 %v2355_v51  ;;  %v2403_v40 = vpack.c.bf16 %v813_v33, %v805_v32  ;;  %v819_v42 = vld [vmem:[#allocation2 + $0x328] sm:$0xff]  ;;  %v821_v44 = vld [vmem:[#allocation2 + $0x338] sm:$0xff]  ;;  %v2373_v46 = vpack.c.bf16 %v810_v38, %v802_v37  ;;  %v2405_v47 = vpack.c.bf16 %v812_v41, %v804_v39  ;;  %v818_v50 = vld [vmem:[#allocation2 + $0x320] sm:$0xff] }
 0x16e   : > { %2388 = vmatprep.subr.bf16.mxu1 %v2387_v55  ;;  %1052 = vmatprep.mubr.f32.mxu0 %v3178_v0  ;;  %v827_v43 = vld [vmem:[#allocation2 + $0x368] sm:$0xff]  ;;  %v829_v45 = vld [vmem:[#allocation2 + $0x378] sm:$0xff]  ;;  %v826_v51 = vld [vmem:[#allocation2 + $0x360] sm:$0xff] }
 0x16f   : > { %1123 = vmatprep.mubr.f32.mxu1 %v3178_v0  ;;  %v2375_v49 = vpack.c.bf16 %v827_v43, %v819_v42  ;;  %v820_v52 = vld [vmem:[#allocation2 + $0x330] sm:$0xff]  ;;  %v2407_v53 = vpack.c.bf16 %v829_v45, %v821_v44  ;;  %v835_v55 = vld [vmem:[#allocation2 + $0x3a8] sm:$0xff]  ;;  %v837_v57 = vld [vmem:[#allocation2 + $0x3b8] sm:$0xff]  ;;  %v2377_v59 = vpack.c.bf16 %v826_v51, %v818_v50 }
 0x170   : > { %2358 = vmatpush1.bf16.msra.mxu0 %v2357_v61  ;;  %v828_v54 = vld [vmem:[#allocation2 + $0x370] sm:$0xff]  ;;  %v843_v56 = vld [vmem:[#allocation2 + $0x3e8] sm:$0xff]  ;;  %v845_v58 = vld [vmem:[#allocation2 + $0x3f8] sm:$0xff] }
 0x171   : > { %2390 = vmatpush1.bf16.msra.mxu1 %v2389_v62  ;;  %2360 = vmatprep.subr.bf16.mxu0 %v2359_v63  ;;  %v2409_v60 = vpack.c.bf16 %v828_v54, %v820_v52  ;;  %v2379_v61 = vpack.c.bf16 %v843_v56, %v835_v55  ;;  %v834_v62 = vld [vmem:[#allocation2 + $0x3a0] sm:$0xff]  ;;  %v836_v1 = vld [vmem:[#allocation2 + $0x3b0] sm:$0xff]  ;;  %v2411_v2 = vpack.c.bf16 %v845_v58, %v837_v57  ;;  %v1249_v5 = vld [vmem:[#allocation8 + $0x28] sm:$0xff] }
 0x172   : > { %2392 = vmatprep.subr.bf16.mxu1 %v2391_v4  ;;  %v842_v63 = vld [vmem:[#allocation2 + $0x3e0] sm:$0xff]  ;;  %v844_v3 = vld [vmem:[#allocation2 + $0x3f0] sm:$0xff]  ;;  %v1245_v4 = vld [vmem:[#allocation8 + $0x8] sm:$0xff] }
 0x173   : > { %v1247_v6 = vld [vmem:[#allocation8 + $0x18] sm:$0xff]  ;;  %v2381_v8 = vpack.c.bf16 %v842_v63, %v834_v62  ;;  %v2413_v9 = vpack.c.bf16 %v844_v3, %v836_v1  ;;  %v1246_v13 = vld [vmem:[#allocation8 + $0x10] sm:$0xff]  ;;  %v1257_v17 = vld [vmem:[#allocation8 + $0x68] sm:$0xff] }
 0x174   : > { %2362 = vmatpush1.bf16.msra.mxu0 %v2361_v10  ;;  %v1251_v7 = vld [vmem:[#allocation8 + $0x38] sm:$0xff]  ;;  %v2415_v10 = vpack.c.bf16 %v1249_v5, %v1245_v4  ;;  %v1250_v15 = vld [vmem:[#allocation8 + $0x30] sm:$0xff]  ;;  %v1265_v29 = vld [vmem:[#allocation8 + $0xa8] sm:$0xff] }
 0x175   : > { %2394 = vmatpush1.bf16.msra.mxu1 %v2393_v11  ;;  %2364 = vmatprep.subr.bf16.mxu0 %v2363_v12  ;;  %v1244_v11 = vld [vmem:[#allocation8] sm:$0xff]  ;;  %v2479_v14 = vpack.c.bf16 %v1251_v7, %v1247_v6  ;;  %v1255_v18 = vld [vmem:[#allocation8 + $0x58] sm:$0xff]  ;;  %v2481_v21 = vpack.c.bf16 %v1250_v15, %v1246_v13  ;;  %v1254_v25 = vld [vmem:[#allocation8 + $0x50] sm:$0xff] }
 0x176   : > { %2396 = vmatprep.subr.bf16.mxu1 %v2395_v16  ;;  %v1248_v12 = vld [vmem:[#allocation8 + $0x20] sm:$0xff]  ;;  %v1253_v16 = vld [vmem:[#allocation8 + $0x48] sm:$0xff]  ;;  %v1259_v19 = vld [vmem:[#allocation8 + $0x78] sm:$0xff] }
 0x177   : > { %v2417_v20 = vpack.c.bf16 %v1248_v12, %v1244_v11  ;;  %v2483_v26 = vpack.c.bf16 %v1259_v19, %v1255_v18  ;;  %v1258_v27 = vld [vmem:[#allocation8 + $0x70] sm:$0xff]  ;;  %v1263_v30 = vld [vmem:[#allocation8 + $0x98] sm:$0xff]  ;;  %v1273_v41 = vld [vmem:[#allocation8 + $0xe8] sm:$0xff] }
 0x178   : > { %2366 = vmatpush1.bf16.msra.mxu0 %v2365_v22  ;;  %v2419_v22 = vpack.c.bf16 %v1257_v17, %v1253_v16  ;;  %v1267_v31 = vld [vmem:[#allocation8 + $0xb8] sm:$0xff]  ;;  %v2485_v33 = vpack.c.bf16 %v1258_v27, %v1254_v25  ;;  %v1262_v37 = vld [vmem:[#allocation8 + $0x90] sm:$0xff]  ;;  %v1277_v52 = vld [vmem:[#allocation8 + $0x108] sm:$0xff] }
 0x179   : > { %2398 = vmatpush1.bf16.msra.mxu1 %v2397_v23  ;;  %2368 = vmatprep.subr.bf16.mxu0 %v2367_v24  ;;  %v1252_v23 = vld [vmem:[#allocation8 + $0x40] sm:$0xff]  ;;  %v2487_v38 = vpack.c.bf16 %v1267_v31, %v1263_v30  ;;  %v1266_v39 = vld [vmem:[#allocation8 + $0xb0] sm:$0xff]  ;;  %v1271_v42 = vld [vmem:[#allocation8 + $0xd8] sm:$0xff] }
 0x17a   : > { %2400 = vmatprep.subr.bf16.mxu1 %v2399_v28  ;;  %v1256_v24 = vld [vmem:[#allocation8 + $0x60] sm:$0xff]  ;;  %v1261_v28 = vld [vmem:[#allocation8 + $0x88] sm:$0xff]  ;;  %v1275_v43 = vld [vmem:[#allocation8 + $0xf8] sm:$0xff] }
 0x17b   : > { %v2421_v32 = vpack.c.bf16 %v1256_v24, %v1252_v23  ;;  %v2491_v50 = vpack.c.bf16 %v1275_v43, %v1271_v42  ;;  %v1274_v51 = vld [vmem:[#allocation8 + $0xf0] sm:$0xff]  ;;  %v1279_v54 = vld [vmem:[#allocation8 + $0x118] sm:$0xff]  ;;  %v1285_v3 = vld [vmem:[#allocation8 + $0x148] sm:$0xff] }
 0x17c   : > { %2370 = vmatpush1.bf16.msra.mxu0 %v2369_v34  ;;  %v2423_v34 = vpack.c.bf16 %v1265_v29, %v1261_v28  ;;  %v1283_v55 = vld [vmem:[#allocation8 + $0x138] sm:$0xff]  ;;  %v1278_v62 = vld [vmem:[#allocation8 + $0x110] sm:$0xff]  ;;  %v1289_v4 = vld [vmem:[#allocation8 + $0x168] sm:$0xff] }
 0x17d   : > { %2402 = vmatpush1.bf16.msra.mxu1 %v2401_v35  ;;  %2372 = vmatprep.subr.bf16.mxu0 %v2371_v36  ;;  %v1260_v35 = vld [vmem:[#allocation8 + $0x80] sm:$0xff]  ;;  %v1282_v63 = vld [vmem:[#allocation8 + $0x130] sm:$0xff]  ;;  %v2435_v5 = vpack.c.bf16 %v1289_v4, %v1285_v3  ;;  %v1287_v6 = vld [vmem:[#allocation8 + $0x158] sm:$0xff] }
 0x17e   : > { %2404 = vmatprep.subr.bf16.mxu1 %v2403_v40  ;;  %v1264_v36 = vld [vmem:[#allocation8 + $0xa0] sm:$0xff]  ;;  %v1269_v40 = vld [vmem:[#allocation8 + $0xc8] sm:$0xff]  ;;  %v1291_v7 = vld [vmem:[#allocation8 + $0x178] sm:$0xff] }
 0x17f   : > { %v2425_v44 = vpack.c.bf16 %v1264_v36, %v1260_v35  ;;  %v2427_v45 = vpack.c.bf16 %v1273_v41, %v1269_v40  ;;  %v1286_v12 = vld [vmem:[#allocation8 + $0x150] sm:$0xff]  ;;  %v1293_v15 = vld [vmem:[#allocation8 + $0x188] sm:$0xff]  ;;  %v1295_v17 = vld [vmem:[#allocation8 + $0x198] sm:$0xff] }
 0x180   : > { %2374 = vmatpush1.bf16.msra.mxu0 %v2373_v46  ;;  %v1268_v46 = vld [vmem:[#allocation8 + $0xc0] sm:$0xff]  ;;  %v1290_v13 = vld [vmem:[#allocation8 + $0x170] sm:$0xff]  ;;  %v1297_v16 = vld [vmem:[#allocation8 + $0x1a8] sm:$0xff] }
 0x181   : > { %2406 = vmatpush1.bf16.msra.mxu1 %v2405_v47  ;;  %2376 = vmatprep.subr.bf16.mxu0 %v2375_v49  ;;  %v1272_v47 = vld [vmem:[#allocation8 + $0xe0] sm:$0xff]  ;;  %v1270_v49 = vld [vmem:[#allocation8 + $0xd0] sm:$0xff]  ;;  %v2439_v18 = vpack.c.bf16 %v1297_v16, %v1293_v15  ;;  %v1299_v19 = vld [vmem:[#allocation8 + $0x1b8] sm:$0xff] }
 0x182   : > { %2408 = vmatprep.subr.bf16.mxu1 %v2407_v53  ;;  %v1281_v53 = vld [vmem:[#allocation8 + $0x128] sm:$0xff]  ;;  %v2429_v56 = vpack.c.bf16 %v1272_v47, %v1268_v46  ;;  %v2493_v57 = vpack.c.bf16 %v1274_v51, %v1270_v49  ;;  %v1294_v24 = vld [vmem:[#allocation8 + $0x190] sm:$0xff]  ;;  %v1303_v29 = vld [vmem:[#allocation8 + $0x1d8] sm:$0xff] }
 0x183   : > { %v2431_v58 = vpack.c.bf16 %v1281_v53, %v1277_v52  ;;  %v1298_v25 = vld [vmem:[#allocation8 + $0x1b0] sm:$0xff]  ;;  %v1301_v27 = vld [vmem:[#allocation8 + $0x1c8] sm:$0xff]  ;;  %v1307_v31 = vld [vmem:[#allocation8 + $0x1f8] sm:$0xff] }
 0x184   : > { %2378 = vmatpush1.bf16.msra.mxu0 %v2377_v59  ;;  %v1276_v59 = vld [vmem:[#allocation8 + $0x100] sm:$0xff]  ;;  %v1305_v28 = vld [vmem:[#allocation8 + $0x1e8] sm:$0xff]  ;;  %v1302_v36 = vld [vmem:[#allocation8 + $0x1d0] sm:$0xff] }
 0x185   : > { %2410 = vmatpush1.bf16.msra.mxu1 %v2409_v60  ;;  %2380 = vmatprep.subr.bf16.mxu0 %v2379_v61  ;;  %v1280_v60 = vld [vmem:[#allocation8 + $0x120] sm:$0xff]  ;;  %v2495_v61 = vpack.c.bf16 %v1283_v55, %v1279_v54  ;;  %v2443_v30 = vpack.c.bf16 %v1305_v28, %v1301_v27  ;;  %v1313_v40 = vld [vmem:[#allocation8 + $0x228] sm:$0xff]  ;;  %v1311_v41 = vld [vmem:[#allocation8 + $0x218] sm:$0xff] }
 0x186   : > { %2412 = vmatprep.subr.bf16.mxu1 %v2411_v2  ;;  %v2433_v1 = vpack.c.bf16 %v1280_v60, %v1276_v59  ;;  %v2497_v2 = vpack.c.bf16 %v1282_v63, %v1278_v62  ;;  %v1315_v42 = vld [vmem:[#allocation8 + $0x238] sm:$0xff]  ;;  %v1310_v46 = vld [vmem:[#allocation8 + $0x210] sm:$0xff]  ;;  %v1321_v51 = vld [vmem:[#allocation8 + $0x268] sm:$0xff] }
 0x187   : > { %v1314_v49 = vld [vmem:[#allocation8 + $0x230] sm:$0xff]  ;;  %v1319_v54 = vld [vmem:[#allocation8 + $0x258] sm:$0xff]  ;;  %v1329_v62 = vld [vmem:[#allocation8 + $0x2a8] sm:$0xff] }
 0x188   : > { %2382 = vmatpush1.bf16.msra.mxu0 %v2381_v8  ;;  %v1284_v8 = vld [vmem:[#allocation8 + $0x140] sm:$0xff]  ;;  %v2513_v52 = vpack.c.bf16 %v1314_v49, %v1310_v46  ;;  %v1323_v55 = vld [vmem:[#allocation8 + $0x278] sm:$0xff]  ;;  %v1318_v59 = vld [vmem:[#allocation8 + $0x250] sm:$0xff] }
 0x189   : > { %2414 = vmatpush1.bf16.msra.mxu1 %v2413_v9  ;;  %2416 = vmatprep.subr.bf16.mxu0 %v2415_v10  ;;  %v1288_v9 = vld [vmem:[#allocation8 + $0x160] sm:$0xff]  ;;  %v2499_v10 = vpack.c.bf16 %v1291_v7, %v1287_v6  ;;  %v1322_v60 = vld [vmem:[#allocation8 + $0x270] sm:$0xff]  ;;  %v1327_v63 = vld [vmem:[#allocation8 + $0x298] sm:$0xff] }
 0x18a   : > { %2480 = vmatprep.subr.bf16.mxu1 %v2479_v14  ;;  %v2437_v11 = vpack.c.bf16 %v1288_v9, %v1284_v8  ;;  %v2501_v14 = vpack.c.bf16 %v1290_v13, %v1286_v12  ;;  %v2517_v3 = vpack.c.bf16 %v1322_v60, %v1318_v59  ;;  %v1328_v6 = vld [vmem:[#allocation8 + $0x2a0] sm:$0xff]  ;;  %v1326_v7 = vld [vmem:[#allocation8 + $0x290] sm:$0xff]  ;;  %v1335_v12 = vld [vmem:[#allocation8 + $0x2d8] sm:$0xff] }
 0x18b   : > { %1053 = vmatmul.mubr.f32.vlgmr.msra.gmra.mrb[2].mxu0 %v3615_v48  ;;  %v1330_v9 = vld [vmem:[#allocation8 + $0x2b0] sm:$0xff]  ;;  %v1339_v13 = vld [vmem:[#allocation8 + $0x2f8] sm:$0xff]  ;;  %v1361_v49 = vld [vmem:[#allocation8 + $0x3a8] sm:$0xff] }
 0x18c   : > { %1124 = vmatmul.mubr.f32.vlgmr.msra.gmra.mrb[2].mxu1 %v3615_v48  ;;  %2418 = vmatpush1.bf16.msra.mxu0 %v2417_v20  ;;  %v2489_v48 = vpack.c.bf16 %v1266_v39, %v1262_v37  ;;  %v1292_v20 = vld [vmem:[#allocation8 + $0x180] sm:$0xff]  ;;  %v1306_v37 = vld [vmem:[#allocation8 + $0x1f0] sm:$0xff]  ;;  %v2521_v15 = vpack.c.bf16 %v1330_v9, %v1326_v7  ;;  %v1365_v60 = vld [vmem:[#allocation8 + $0x3c8] sm:$0xff] }
 0x18d   : > { %2482 = vmatpush1.bf16.msra.mxu1 %v2481_v21  ;;  %2420 = vmatprep.subr.bf16.mxu0 %v2419_v22  ;;  %v1296_v21 = vld [vmem:[#allocation8 + $0x1a0] sm:$0xff]  ;;  %v2503_v22 = vpack.c.bf16 %v1299_v19, %v1295_v17  ;;  %v2509_v39 = vpack.c.bf16 %v1306_v37, %v1302_v36  ;;  %v1334_v19 = vld [vmem:[#allocation8 + $0x2d0] sm:$0xff]  ;;  %v1349_v36 = vld [vmem:[#allocation8 + $0x348] sm:$0xff] }
 0x18e   : > { %2484 = vmatprep.subr.bf16.mxu1 %v2483_v26  ;;  %v2441_v23 = vpack.c.bf16 %v1296_v21, %v1292_v20  ;;  %v2505_v26 = vpack.c.bf16 %v1298_v25, %v1294_v24  ;;  %v1332_v17 = vld [vmem:[#allocation8 + $0x2c0] sm:$0xff]  ;;  %v2523_v20 = vpack.c.bf16 %v1339_v13, %v1335_v12  ;;  %v1338_v21 = vld [vmem:[#allocation8 + $0x2f0] sm:$0xff]  ;;  %v1343_v24 = vld [vmem:[#allocation8 + $0x318] sm:$0xff] }
 0x18f   : > { %v1347_v25 = vld [vmem:[#allocation8 + $0x338] sm:$0xff]  ;;  %v2525_v27 = vpack.c.bf16 %v1338_v21, %v1334_v19  ;;  %v1353_v37 = vld [vmem:[#allocation8 + $0x368] sm:$0xff]  ;;  %v1370_v7 = vld [vmem:[#allocation8 + $0x3f0] sm:$0xff] }
 0x190   : > { %2422 = vmatpush1.bf16.msra.mxu0 %v2421_v32  ;;  %v1300_v32 = vld [vmem:[#allocation8 + $0x1c0] sm:$0xff]  ;;  %v1574_v9 = vld [vmem:[%s3856_s7 + $0x8] sm:$0xff]  ;;  %v1130_v19 = vld [vmem:[#allocation5] sm:$0xff] }
 0x191   : > { %2486 = vmatpush1.bf16.msra.mxu1 %v2485_v33  ;;  %2424 = vmatprep.subr.bf16.mxu0 %v2423_v34  ;;  %v1304_v33 = vld [vmem:[#allocation8 + $0x1e0] sm:$0xff]  ;;  %v2507_v34 = vpack.c.bf16 %v1307_v31, %v1303_v29  ;;  %v2527_v31 = vpack.c.bf16 %v1347_v25, %v1343_v24  ;;  %v1180_v24 = vld [vmem:[#allocation7] sm:$0xff] }
 0x192   : > { %2488 = vmatprep.subr.bf16.mxu1 %v2487_v38  ;;  %v2445_v35 = vpack.c.bf16 %v1304_v33, %v1300_v32  ;;  %v1309_v38 = vld [vmem:[#allocation8 + $0x208] sm:$0xff]  ;;  %v1340_v29 = vld [vmem:[#allocation8 + $0x300] sm:$0xff]  ;;  %v1342_v32 = vld [vmem:[#allocation8 + $0x310] sm:$0xff] }
 0x193   : > { %v2447_v43 = vpack.c.bf16 %v1313_v40, %v1309_v38  ;;  %v1346_v33 = vld [vmem:[#allocation8 + $0x330] sm:$0xff]  ;;  %v1351_v38 = vld [vmem:[#allocation8 + $0x358] sm:$0xff] }
 0x194   : > { %2426 = vmatpush1.bf16.msra.mxu0 %v2425_v44  ;;  %v2511_v44 = vpack.c.bf16 %v1315_v42, %v1311_v41  ;;  %v1355_v40 = vld [vmem:[#allocation8 + $0x378] sm:$0xff]  ;;  %v1348_v41 = vld [vmem:[#allocation8 + $0x340] sm:$0xff] }
 0x195   : > { %2490 = vmatpush1.bf16.msra.mxu1 %v2489_v48  ;;  %2428 = vmatprep.subr.bf16.mxu0 %v2427_v45  ;;  %v1308_v48 = vld [vmem:[#allocation8 + $0x200] sm:$0xff] }
 0x196   : > { %2492 = vmatprep.subr.bf16.mxu1 %v2491_v50  ;;  %v1312_v45 = vld [vmem:[#allocation8 + $0x220] sm:$0xff]  ;;  %v1317_v50 = vld [vmem:[#allocation8 + $0x248] sm:$0xff] }
 0x197   : > { %v2449_v47 = vpack.c.bf16 %v1312_v45, %v1308_v48  ;;  %v2451_v53 = vpack.c.bf16 %v1321_v51, %v1317_v50  ;;  %v1352_v42 = vld [vmem:[#allocation8 + $0x360] sm:$0xff]  ;;  %v1354_v48 = vld [vmem:[#allocation8 + $0x370] sm:$0xff]  ;;  %v1359_v50 = vld [vmem:[#allocation8 + $0x398] sm:$0xff] }
 0x198   : > { %2430 = vmatpush1.bf16.msra.mxu0 %v2429_v56  ;;  %v1316_v56 = vld [vmem:[#allocation8 + $0x240] sm:$0xff]  ;;  %v2469_v45 = vpack.c.bf16 %v1352_v42, %v1348_v41 }
 0x199   : > { %2494 = vmatpush1.bf16.msra.mxu1 %v2493_v57  ;;  %2432 = vmatprep.subr.bf16.mxu0 %v2431_v58  ;;  %v2515_v57 = vpack.c.bf16 %v1323_v55, %v1319_v54  ;;  %v1320_v58 = vld [vmem:[#allocation8 + $0x260] sm:$0xff] }
 0x19a   : > { %2496 = vmatprep.subr.bf16.mxu1 %v2495_v61  ;;  %v1325_v61 = vld [vmem:[#allocation8 + $0x288] sm:$0xff]  ;;  %v1360_v54 = vld [vmem:[#allocation8 + $0x3a0] sm:$0xff] }
 0x19b   : > { %v2455_v4 = vpack.c.bf16 %v1329_v62, %v1325_v61  ;;  %v1369_v61 = vld [vmem:[#allocation8 + $0x3e8] sm:$0xff]  ;;  %v1367_v62 = vld [vmem:[#allocation8 + $0x3d8] sm:$0xff] }
 0x19c   : > { %2434 = vmatpush1.bf16.msra.mxu0 %v2433_v1  ;;  %v2453_v1 = vpack.c.bf16 %v1320_v58, %v1316_v56  ;;  %v1362_v58 = vld [vmem:[#allocation8 + $0x3b0] sm:$0xff] }
 0x19d   : > { %2498 = vmatpush1.bf16.msra.mxu1 %v2497_v2  ;;  %2436 = vmatprep.subr.bf16.mxu0 %v2435_v5  ;;  %v1331_v2 = vld [vmem:[#allocation8 + $0x2b8] sm:$0xff]  ;;  %v1324_v5 = vld [vmem:[#allocation8 + $0x280] sm:$0xff] }
 0x19e   : > { %2500 = vmatprep.subr.bf16.mxu1 %v2499_v10  ;;  %v2519_v8 = vpack.c.bf16 %v1331_v2, %v1327_v63  ;;  %v1333_v10 = vld [vmem:[#allocation8 + $0x2c8] sm:$0xff]  ;;  %v2475_v63 = vpack.c.bf16 %v1369_v61, %v1365_v60  ;;  %v1364_v2 = vld [vmem:[#allocation8 + $0x3c0] sm:$0xff] }
 0x1a0   : > { %2438 = vmatpush1.bf16.msra.mxu0 %v2437_v11  ;;  %v1337_v11 = vld [vmem:[#allocation8 + $0x2e8] sm:$0xff] }
 0x1a1   : > { %2502 = vmatpush1.bf16.msra.mxu1 %v2501_v14  ;;  %2440 = vmatprep.subr.bf16.mxu0 %v2439_v18  ;;  %v2457_v14 = vpack.c.bf16 %v1328_v6, %v1324_v5  ;;  %v2459_v16 = vpack.c.bf16 %v1337_v11, %v1333_v10  ;;  %v1336_v18 = vld [vmem:[#allocation8 + $0x2e0] sm:$0xff]  ;;  %v1366_v6 = vld [vmem:[#allocation8 + $0x3d0] sm:$0xff]  ;;  %v1576_v10 = vld [vmem:[%s3856_s7 + $0x18] sm:$0xff] }
 0x1a2   : > { %2504 = vmatprep.subr.bf16.mxu1 %v2503_v22  ;;  %v1341_v22 = vld [vmem:[#allocation8 + $0x308] sm:$0xff]  ;;  %v2543_v11 = vpack.c.bf16 %v1576_v10, %v1574_v9 }
 0x1a4   : > { %2442 = vmatpush1.bf16.msra.mxu0 %v2441_v23  ;;  %v1345_v23 = vld [vmem:[#allocation8 + $0x328] sm:$0xff] }
 0x1a5   : > { %2506 = vmatpush1.bf16.msra.mxu1 %v2505_v26  ;;  %2444 = vmatprep.subr.bf16.mxu0 %v2443_v30  ;;  %v2461_v26 = vpack.c.bf16 %v1336_v18, %v1332_v17  ;;  %v2463_v28 = vpack.c.bf16 %v1345_v23, %v1341_v22  ;;  %v1344_v30 = vld [vmem:[#allocation8 + $0x320] sm:$0xff] }
 0x1a6   : > { %2508 = vmatprep.subr.bf16.mxu1 %v2507_v34  ;;  %v2465_v34 = vpack.c.bf16 %v1344_v30, %v1340_v29 }
 0x1a8   : > { %2446 = vmatpush1.bf16.msra.mxu0 %v2445_v35  ;;  %v2529_v35 = vpack.c.bf16 %v1346_v33, %v1342_v32 }
 0x1a9   : > { %2510 = vmatpush1.bf16.msra.mxu1 %v2509_v39  ;;  %2448 = vmatprep.subr.bf16.mxu0 %v2447_v43  ;;  %v2467_v39 = vpack.c.bf16 %v1353_v37, %v1349_v36  ;;  %v2531_v43 = vpack.c.bf16 %v1355_v40, %v1351_v38 }
 0x1aa   : > { %2512 = vmatprep.subr.bf16.mxu1 %v2511_v44  ;;  %v1350_v44 = vld [vmem:[#allocation8 + $0x350] sm:$0xff] }
 0x1ab   : > { %v2533_v46 = vpack.c.bf16 %v1354_v48, %v1350_v44 }
 0x1ac   : > { %2450 = vmatpush1.bf16.msra.mxu0 %v2449_v47  ;;  %v1357_v47 = vld [vmem:[#allocation8 + $0x388] sm:$0xff] }
 0x1ad   : > { %2514 = vmatpush1.bf16.msra.mxu1 %v2513_v52  ;;  %2452 = vmatprep.subr.bf16.mxu0 %v2451_v53  ;;  %v2471_v51 = vpack.c.bf16 %v1361_v49, %v1357_v47  ;;  %v1363_v52 = vld [vmem:[#allocation8 + $0x3b8] sm:$0xff]  ;;  %v1356_v53 = vld [vmem:[#allocation8 + $0x380] sm:$0xff] }
 0x1ae   : > { %2516 = vmatprep.subr.bf16.mxu1 %v2515_v57  ;;  %v2535_v55 = vpack.c.bf16 %v1363_v52, %v1359_v50  ;;  %v2473_v56 = vpack.c.bf16 %v1360_v54, %v1356_v53  ;;  %v1358_v57 = vld [vmem:[#allocation8 + $0x390] sm:$0xff] }
 0x1af   : > { %v2537_v59 = vpack.c.bf16 %v1362_v58, %v1358_v57 }
 0x1b0   : > { %2454 = vmatpush1.bf16.msra.mxu0 %v2453_v1  ;;  %v1371_v1 = vld [vmem:[#allocation8 + $0x3f8] sm:$0xff] }
 0x1b1   : > { %2518 = vmatpush1.bf16.msra.mxu1 %v2517_v3  ;;  %2456 = vmatprep.subr.bf16.mxu0 %v2455_v4  ;;  %v1368_v3 = vld [vmem:[#allocation8 + $0x3e0] sm:$0xff]  ;;  %v2539_v4 = vpack.c.bf16 %v1371_v1, %v1367_v62 }
 0x1b2   : > { %2520 = vmatprep.subr.bf16.mxu1 %v2519_v8  ;;  %v2477_v5 = vpack.c.bf16 %v1368_v3, %v1364_v2  ;;  %v2541_v8 = vpack.c.bf16 %v1370_v7, %v1366_v6 }
 0x1b4   : > { %2458 = vmatpush1.bf16.msra.mxu0 %v2457_v14 }
 0x1b5   : > { %2522 = vmatpush1.bf16.msra.mxu1 %v2521_v15  ;;  %2460 = vmatprep.subr.bf16.mxu0 %v2459_v16  ;;  %v1132_v16 = vlaneseq }
 0x1b6   : > { %2524 = vmatprep.subr.bf16.mxu1 %v2523_v20 }
 0x1b7   : > { %v1133_v17 = vshrl.u32 %v1132_v16, 7  ;;  %v1580_v16 = vld [vmem:[%s3856_s7 + $0x38] sm:$0xff] }
 0x1b8   : > { %2462 = vmatpush1.bf16.msra.mxu0 %v2461_v26 }
 0x1b9   : > { %2526 = vmatpush1.bf16.msra.mxu1 %v2525_v27  ;;  %2464 = vmatprep.subr.bf16.mxu0 %v2463_v28  ;;  %v3629_v18 = vsub.s32 0, %v1133_v17  ;;  %v3631_v20 = vsub.s32 2, %v1133_v17  ;;  %v3633_v21 = vsub.s32 1, %v1133_v17  ;;  %v3635_v22 = vsub.s32 3, %v1133_v17 }
 0x1ba   : > { %2528 = vmatprep.subr.bf16.mxu1 %v2527_v31  ;;  %v1150_v25 = vsub.s32 4, %v1133_v17  ;;  %v1158_v28 = vsub.s32 6, %v1133_v17  ;;  %v1154_v29 = vsub.s32 5, %v1133_v17  ;;  %v1162_v31 = vsub.s32 7, %v1133_v17 }
 0x1bb   : > { %v1135_v23 = vrot.slane %v1130_v19, %v3629_v18  ;;  %v1143_v26 = vrot.slane %v1130_v19, %v3631_v20  ;;  %v1139_v27 = vrot.slane %v1130_v19, %v3633_v21  ;;  %v1147_v30 = vrot.slane %v1130_v19, %v3635_v22 }
 0x1bc   : > { %2466 = vmatpush1.bf16.msra.mxu0 %v2465_v34  ;;  %v1185_v32 = vrot.slane %v1180_v24, %v3629_v18  ;;  %v1193_v34 = vrot.slane %v1180_v24, %v3631_v20  ;;  %v1151_v36 = vrot.slane %v1130_v19, %v1150_v25  ;;  %v1155_v40 = vrot.slane %v1130_v19, %v1154_v29 }
 0x1bd   : > { %2530 = vmatpush1.bf16.msra.mxu1 %v2529_v35  ;;  %2468 = vmatprep.subr.bf16.mxu0 %v2467_v39  ;;  %v1189_v35 = vrot.slane %v1180_v24, %v3633_v21  ;;  %v1159_v39 = vrot.slane %v1130_v19, %v1158_v28  ;;  %v1197_v42 = vrot.slane %v1180_v24, %v3635_v22 }
 0x1be   : > { %2532 = vmatprep.subr.bf16.mxu1 %v2531_v43  ;;  %v1201_v43 = vrot.slane %v1180_v24, %v1150_v25  ;;  %v1163_v44 = vrot.slane %v1130_v19, %v1162_v31  ;;  %v1213_v52 = vrot.slane %v1180_v24, %v1162_v31  ;;  %v1577_v25 = vld [vmem:[%s3856_s7 + $0x20] sm:$0xff] }
 0x1bf   : > { %v1581_v31 = vld [vmem:[%s3856_s7 + $0x40] sm:$0xff] }
 0x1c0   : > { %2470 = vmatpush1.bf16.msra.mxu0 %v2469_v45  ;;  %v1209_v45 = vrot.slane %v1180_v24, %v1158_v28  ;;  %v1584_v28 = vld [vmem:[%s3856_s7 + $0x58] sm:$0xff] }
 0x1c1   : > { %2534 = vmatpush1.bf16.msra.mxu1 %v2533_v46  ;;  %2472 = vmatprep.subr.bf16.mxu0 %v2471_v51  ;;  %v1205_v46 = vrot.slane %v1180_v24, %v1154_v29 }
 0x1c2   : > { %2536 = vmatprep.subr.bf16.mxu1 %v2535_v55 }
 0x1c4   : > { %2474 = vmatpush1.bf16.msra.mxu0 %v2473_v56 }
 0x1c5   : > { %2538 = vmatpush1.bf16.msra.mxu1 %v2537_v59  ;;  %2476 = vmatprep.subr.bf16.mxu0 %v2475_v63 }
 0x1c6   : > { %2540 = vmatprep.subr.bf16.mxu1 %v2539_v4 }
 0x1c8   : > { %2478 = vmatpush1.bf16.msra.mxu0 %v2477_v5 }
 0x1c9   : > { %2542 = vmatpush1.bf16.msra.mxu1 %v2541_v8  ;;  %2544 = vmatprep.subr.bf16.mxu0 %v2543_v11 }
 0x23e   : > { %v912_v12 = vpop.f32.mrb[0].mxu0 }
 0x23f   : > { %v983_v13 = vpop.f32.mrb[0].mxu1  ;;  %v914_v14 = vpop.f32.mrb[1].mxu0  ;;  %v1172_v33 = vmul.f32 %v1135_v23, %v912_v12  ;;  %v1573_v12 = vld [vmem:[%s3856_s7] sm:$0xff] }
 0x240   : > { %v985_v15 = vpop.f32.mrb[1].mxu1  ;;  %v1174_v37 = vmul.f32 %v1143_v26, %v983_v13  ;;  %v1173_v38 = vmul.f32 %v1139_v27, %v914_v14  ;;  %v1575_v13 = vld [vmem:[%s3856_s7 + $0x10] sm:$0xff]  ;;  %v1582_v27 = vld [vmem:[%s3856_s7 + $0x48] sm:$0xff] }
 0x241   : > { %v1175_v41 = vmul.f32 %v1147_v30, %v985_v15  ;;  %v1222_v47 = vadd.f32 %v1185_v32, %v1172_v33  ;;  %v1578_v15 = vld [vmem:[%s3856_s7 + $0x28] sm:$0xff]  ;;  %v2545_v23 = vpack.c.bf16 %v1575_v13, %v1573_v12  ;;  %v1579_v26 = vld [vmem:[%s3856_s7 + $0x30] sm:$0xff]  ;;  %v2551_v30 = vpack.c.bf16 %v1584_v28, %v1582_v27 }
 0x242   : > { %v1224_v53 = vadd.f32 %v1193_v34, %v1174_v37  ;;  %v1223_v54 = vadd.f32 %v1189_v35, %v1173_v38  ;;  %v2547_v24 = vpack.c.bf16 %v1580_v16, %v1578_v15  ;;  %v2549_v29 = vpack.c.bf16 %v1579_v26, %v1577_v25  ;;  %v1583_v32 = vld [vmem:[%s3856_s7 + $0x50] sm:$0xff]  ;;  %v1586_v33 = vld [vmem:[%s3856_s7 + $0x68] sm:$0xff]  ;;  %v1588_v34 = vld [vmem:[%s3856_s7 + $0x78] sm:$0xff] }
 0x243   : > { %v1225_v58 = vadd.f32 %v1197_v42, %v1175_v41  ;;  %v1230_v63 = vmax.f32 %v1222_v47, 0.0  ;;  %v2553_v35 = vpack.c.bf16 %v1583_v32, %v1581_v31  ;;  %v1585_v37 = vld [vmem:[%s3856_s7 + $0x60] sm:$0xff]  ;;  %v1587_v38 = vld [vmem:[%s3856_s7 + $0x70] sm:$0xff] }
 0x244   : > { %v1232_v3 = vmax.f32 %v1224_v53, 0.0  ;;  %v1231_v4 = vmax.f32 %v1223_v54, 0.0  ;;  %v2557_v41 = vpack.c.bf16 %v1587_v38, %v1585_v37  ;;  %v1600_v53 = vld [vmem:[%s3856_s7 + $0xd8] sm:$0xff] }
 0x245   : > { %v1233_v7 = vmax.f32 %v1225_v58, 0.0  ;;  %v1602_v58 = vld [vmem:[%s3856_s7 + $0xe8] sm:$0xff]  ;;  %v1715_v37 = vld [vmem:[#allocation16 + $0x18] sm:$0xff] }
 0x25e   : > { %v1054_v48 = vpop.f32.mrb[2].mxu0 }
 0x25f   : > { %v1176_v49 = vmul.f32 %v1151_v36, %v1054_v48  ;;  %v1125_v50 = vpop.f32.mrb[2].mxu1  ;;  %v1056_v51 = vpop.f32.mrb[3].mxu0  ;;  %v2555_v36 = vpack.c.bf16 %v1588_v34, %v1586_v33  ;;  %v1712_v33 = vld [vmem:[#allocation16] sm:$0xff]  ;;  %v1714_v34 = vld [vmem:[#allocation16 + $0x10] sm:$0xff] }
 0x260   : > { %v1178_v55 = vmul.f32 %v1159_v39, %v1125_v50  ;;  %v1177_v56 = vmul.f32 %v1155_v40, %v1056_v51  ;;  %v1127_v57 = vpop.f32.mrb[3].mxu1  ;;  %v1590_v39 = vld [vmem:[%s3856_s7 + $0x88] sm:$0xff]  ;;  %v1592_v40 = vld [vmem:[%s3856_s7 + $0x98] sm:$0xff]  ;;  %v1595_v50 = vld [vmem:[%s3856_s7 + $0xb0] sm:$0xff]  ;;  %v2579_v38 = vpack.c.bf16 %v1715_v37, %v1714_v34 }
 0x261   : > { %v1226_v59 = vadd.f32 %v1201_v43, %v1176_v49  ;;  %v1179_v60 = vmul.f32 %v1163_v44, %v1127_v57  ;;  %v2559_v42 = vpack.c.bf16 %v1592_v40, %v1590_v39  ;;  %v1589_v43 = vld [vmem:[%s3856_s7 + $0x80] sm:$0xff]  ;;  %v1591_v44 = vld [vmem:[%s3856_s7 + $0x90] sm:$0xff] }
 0x262   : > { %v1228_v61 = vadd.f32 %v1209_v45, %v1178_v55  ;;  %v1227_v62 = vadd.f32 %v1205_v46, %v1177_v56  ;;  %v2561_v48 = vpack.c.bf16 %v1591_v44, %v1589_v43  ;;  %v1594_v45 = vld [vmem:[%s3856_s7 + $0xa8] sm:$0xff]  ;;  %v1596_v46 = vld [vmem:[%s3856_s7 + $0xb8] sm:$0xff]  ;;  %v1593_v49 = vld [vmem:[%s3856_s7 + $0xa0] sm:$0xff] }
 0x263   : > { %v1234_v1 = vmax.f32 %v1226_v59, 0.0  ;;  %v1229_v2 = vadd.f32 %v1213_v52, %v1179_v60  ;;  %v2563_v47 = vpack.c.bf16 %v1596_v46, %v1594_v45  ;;  %v2565_v51 = vpack.c.bf16 %v1595_v50, %v1593_v49  ;;  %v1598_v52 = vld [vmem:[%s3856_s7 + $0xc8] sm:$0xff]  ;;  %v1597_v55 = vld [vmem:[%s3856_s7 + $0xc0] sm:$0xff]  ;;  %v1599_v56 = vld [vmem:[%s3856_s7 + $0xd0] sm:$0xff] }
 0x264   : > { %v1236_v5 = vmax.f32 %v1228_v61, 0.0  ;;  %v1235_v6 = vmax.f32 %v1227_v62, 0.0  ;;  %v2567_v54 = vpack.c.bf16 %v1600_v53, %v1598_v52  ;;  %v2569_v57 = vpack.c.bf16 %v1599_v56, %v1597_v55  ;;  %v1604_v59 = vld [vmem:[%s3856_s7 + $0xf8] sm:$0xff]  ;;  %v1601_v61 = vld [vmem:[%s3856_s7 + $0xe0] sm:$0xff]  ;;  %v1603_v62 = vld [vmem:[%s3856_s7 + $0xf0] sm:$0xff] }
 0x265   : > { %v1238_v8 = vmax.f32 %v1230_v63, %v1234_v1  ;;  %v1237_v9 = vmax.f32 %v1229_v2, 0.0  ;;  %v2571_v60 = vpack.c.bf16 %v1604_v59, %v1602_v58  ;;  %v2573_v63 = vpack.c.bf16 %v1603_v62, %v1601_v61  ;;  %v1514_v1 = vld [vmem:[#allocation10] sm:$0xf]  ;;  %v1540_v2 = vld [vmem:[#allocation11] sm:$0xf]  ;;  %v1716_v39 = vld [vmem:[#allocation16 + $0x20] sm:$0xff] }
 0x266   : > { %v1240_v10 = vmax.f32 %v1232_v3, %v1236_v5  ;;  %v1239_v11 = vmax.f32 %v1231_v4, %v1235_v6  ;;  %v1519_v3 = vrot.slane %v1514_v1, %v3629_v18  ;;  %v1527_v4 = vrot.slane %v1514_v1, %v3631_v20  ;;  %v1717_v40 = vld [vmem:[#allocation16 + $0x28] sm:$0xff]  ;;  %v1719_v43 = vld [vmem:[#allocation16 + $0x38] sm:$0xff] }
 0x267   : > { %v1241_v14 = vmax.f32 %v1233_v7, %v1237_v9  ;;  %v1523_v5 = vrot.slane %v1514_v1, %v3633_v21  ;;  %v1531_v6 = vrot.slane %v1514_v1, %v3635_v22  ;;  %v1545_v7 = vrot.slane %v1540_v2, %v3629_v18  ;;  %v1676_v44 = vld [vmem:[#allocation13] sm:$0x3]  ;;  %v1690_v45 = vld [vmem:[#allocation14] sm:$0x3] }
 0x268   : > { %v1242_v17 = vmax.f32 %v1238_v8, %v1240_v10  ;;  %v1553_v8 = vrot.slane %v1540_v2, %v3631_v20  ;;  %v1557_v12 = vrot.slane %v1540_v2, %v3635_v22  ;;  %v1713_v22 = vld [vmem:[#allocation16 + $0x8] sm:$0xff]  ;;  %v1681_v46 = vrot.slane %v1676_v44, %v3629_v18  ;;  %v1814_v1 = vld [vmem:[%s3862_s13 + $0x18] sm:$0xff] }
 0x269   : > { %v1243_v19 = vmax.f32 %v1239_v11, %v1241_v14  ;;  %v1549_v11 = vrot.slane %v1540_v2, %v3633_v21  ;;  %v1695_v49 = vrot.slane %v1690_v45, %v3629_v18  ;;  %v1812_v18 = vld [vmem:[%s3862_s13 + $0x8] sm:$0xff] }
 0x26b   : > { %1436 = vmatprep.mubr.f32.mxu0 %v1243_v19  ;;  %1507 = vmatprep.mubr.f32.mxu1 %v1243_v19 }
 0x26c   : > { %1437 = vmatmul.mubr.f32.vlgmr.msra.gmra.mrb[4].mxu0 %v1242_v17  ;;  %1508 = vmatmul.mubr.f32.vlgmr.msra.gmra.mrb[4].mxu1 %v1242_v17 }
 0x26d   : > { %2546 = vmatpush1.bf16.msra.mxu0 %v2545_v23  ;;  %1669 = vmatprep.mubr.f32.mxu0 %v3178_v0 }
 0x26e   : > { %2548 = vmatprep.subr.bf16.mxu0 %v2547_v24  ;;  %2254 = vmatprep.mubr.msk.f32.mxu1 %vm3180_vm0, %v3178_v0 }
 0x271   : > { %2550 = vmatpush1.bf16.msra.mxu0 %v2549_v29 }
 0x272   : > { %2552 = vmatprep.subr.bf16.mxu0 %v2551_v30 }
 0x275   : > { %2554 = vmatpush1.bf16.msra.mxu0 %v2553_v35  ;;  %v3179_v35 = vmov 0.0|0.0  }
 0x276   : > { %2556 = vmatprep.subr.bf16.mxu0 %v2555_v36  ;;  %2575 = vmatprep.subr.bf16.mxu1 %v3179_v35  ;;  %v2576_v36 = vpack.c.bf16 %v1713_v22, %v1712_v33 }
 0x278   : > { %2577 = vmatpush3.bf16.msra.mxu1 %v2576_v36 }
 0x279   : > { %2558 = vmatpush1.bf16.msra.mxu0 %v2557_v41  ;;  %2578 = vmatprep.subr.bf16.mxu1 %v3179_v35  ;;  %v2582_v41 = vpack.c.bf16 %v1717_v40, %v1716_v39 }
 0x27a   : > { %2560 = vmatprep.subr.bf16.mxu0 %v2559_v42  ;;  %v1718_v42 = vld [vmem:[#allocation16 + $0x30] sm:$0xff] }
 0x27c   : > { %2580 = vmatpush3.bf16.msra.mxu1 %v2579_v38 }
 0x27d   : > { %2562 = vmatpush1.bf16.msra.mxu0 %v2561_v48  ;;  %2581 = vmatprep.subr.bf16.mxu1 %v3179_v35  ;;  %v2585_v48 = vpack.c.bf16 %v1719_v43, %v1718_v42 }
 0x27e   : > { %2564 = vmatprep.subr.bf16.mxu0 %v2563_v47  ;;  %v1685_v47 = vrot.slane %v1676_v44, %v3633_v21 }
 0x280   : > { %2583 = vmatpush3.bf16.msra.mxu1 %v2582_v41 }
 0x281   : > { %2566 = vmatpush1.bf16.msra.mxu0 %v2565_v51  ;;  %2584 = vmatprep.subr.bf16.mxu1 %v3179_v35  ;;  %v1699_v51 = vrot.slane %v1690_v45, %v3633_v21 }
 0x282   : > { %2568 = vmatprep.subr.bf16.mxu0 %v2567_v54 }
 0x284   : > { %2586 = vmatpush3.bf16.msra.mxu1 %v2585_v48 }
 0x285   : > { %2570 = vmatpush1.bf16.msra.mxu0 %v2569_v57  ;;  %2587 = vmatprep.subr.bf16.mxu1 %v3179_v35 }
 0x286   : > { %2572 = vmatprep.subr.bf16.mxu0 %v2571_v60  ;;  %v1811_v60 = vld [vmem:[%s3862_s13] sm:$0xff] }
 0x287   : > { %v2588_v21 = vpack.c.bf16 %v1812_v18, %v1811_v60 }
 0x289   : > { %2574 = vmatpush1.bf16.msra.mxu0 %v2573_v63  ;;  %v1813_v63 = vld [vmem:[%s3862_s13 + $0x10] sm:$0xff] }
 0x28a   : > { %2599 = vmatprep.subr.bf16.mxu0 %v3179_v35  ;;  %v2591_v2 = vpack.c.bf16 %v1814_v1, %v1813_v63 }
 0x33f   : > { %v1438_v9 = vpop.f32.mrb[4].mxu0  ;;  %v1509_v10 = vpop.f32.mrb[4].mxu1 }
 0x340   : > { %v1536_v13 = vmul.f32 %v1519_v3, %v1438_v9  ;;  %v1538_v14 = vmul.f32 %v1527_v4, %v1509_v10  ;;  %v1440_v15 = vpop.f32.mrb[5].mxu0  ;;  %v1511_v16 = vpop.f32.mrb[5].mxu1  ;;  %v1815_v3 = vld [vmem:[%s3862_s13 + $0x20] sm:$0xff]  ;;  %v1816_v4 = vld [vmem:[%s3862_s13 + $0x28] sm:$0xff] }
 0x341   : > { %v1537_v17 = vmul.f32 %v1523_v5, %v1440_v15  ;;  %v1539_v19 = vmul.f32 %v1531_v6, %v1511_v16  ;;  %v2594_v5 = vpack.c.bf16 %v1816_v4, %v1815_v3  ;;  %v1818_v6 = vld [vmem:[%s3862_s13 + $0x38] sm:$0xff]  ;;  %v2205_v10 = vld [vmem:[%s3861_s12] ss:$0 sm:$0xff]  ;;  %v1910_v16 = vld [vmem:[#allocation17 + $0x8] sm:$0xff] }
 0x342   : > { %v1562_v23 = vadd.f32 %v1545_v7, %v1536_v13  ;;  %v1564_v24 = vadd.f32 %v1553_v8, %v1538_v14  ;;  %v2204_v8 = vld [vmem:[%s3860_s11] ss:$0 sm:$0xff] }
 0x343   : > { %v1563_v25 = vadd.f32 %v1549_v11, %v1537_v17  ;;  %v1565_v26 = vadd.f32 %v1557_v12, %v1539_v19  ;;  %v1909_v15 = vld [vmem:[#allocation17] sm:$0xff]  ;;  %v1911_v19 = vld [vmem:[#allocation17 + $0x10] sm:$0xff] }
 0x344   : > { %v1566_v27 = vmax.f32 %v1562_v23, 0.0  ;;  %v1568_v28 = vmax.f32 %v1564_v24, 0.0  ;;  %v2600_v17 = vpack.c.bf16 %v1910_v16, %v1909_v15  ;;  %v1912_v23 = vld [vmem:[#allocation17 + $0x18] sm:$0xff] }
 0x345   : > { %v1567_v29 = vmax.f32 %v1563_v25, 0.0  ;;  %v1569_v20 = vmax.f32 %v1565_v26, 0.0  ;;  %v2603_v24 = vpack.c.bf16 %v1912_v23, %v1911_v19  ;;  %v2207_v25 = vld [vmem:[%s3927_s25] ss:$0 sm:$0xff]  ;;  %s3079_s25 = scalar_lea.vmem %s3078_s23, 256 }
 0x346   : > { %v1570_v30 = vmax.f32 %v1566_v27, %v1568_v28  ;;  %v2208_v27 = vld [vmem:[%s3928_s1] ss:$0 sm:$0xff]  ;;  %p3081_p9 = scmp.lt.s32.totalorder %s3079_s25, %s3073_s30 }
 0x347   : > { %v1571_v31 = vmax.f32 %v1567_v29, %v1569_v20 }
 0x348   : > { %p3082_p12 = por %p3081_p9, %p3080_p5 }
 0x349   : > { %v1572_v32 = vmax.f32 %v1570_v30, %v1571_v31  ;;  %v2209_v31 = vld [vmem:[#allocation19] ss:$0 sm:$0xff] }
 0x34a   : > { %p3083_p10 = pnand %p3082_p12, %p3076_p6 }
 0x34b   : > { %1670 = vmatmul.mubr.f32.vlgmr.msra.gmra.mrb[6].mxu0 %v1572_v32 }
 0x34c   : > { %2284 = vmatprep.mubr.msk.f32.mxu0 %vm3180_vm0, %v3178_v0  ;;  %2601 = vmatpush3.bf16.msra.mxu0 %v2600_v17 }
 0x34d   : > { %2602 = vmatprep.subr.bf16.mxu0 %v3179_v35 }
 0x350   : > { %2604 = vmatpush3.bf16.msra.mxu0 %v2603_v24 }
 0x41e   : > { %v1671_v50 = vpop.f32.mrb[6].mxu0 }
 0x41f   : > { %v1688_v52 = vmul.f32 %v1681_v46, %v1671_v50  ;;  %v1673_v53 = vpop.f32.mrb[7].mxu0 }
 0x420   : > { %v1689_v54 = vmul.f32 %v1685_v47, %v1673_v53 }
 0x421   : > { %v1702_v55 = vadd.f32 %v1695_v49, %v1688_v52 }
 0x422   : > { %v1703_v56 = vadd.f32 %v1699_v51, %v1689_v54 }
 0x423   : > { %v1704_v57 = vmax.f32 %v1702_v55, 0.0 }
 0x424   : > { %v1705_v58 = vmax.f32 %v1703_v56, 0.0 }
 0x426   : > { %v1706_v59 = vmax.f32 %v1704_v57, %v1705_v58 }
 0x428   : > { %1708 = vrot.lane.b32.xlu0 %v1706_v59, %s3181_s19 }
 0x49a   : > { %v1709_v61 = vpop.permute.xlu0 %1708 }
 0x49b   : > { %v1711_v62 = vmax.f32 %v1706_v59, %v1709_v61 }
 0x49d   : > { %2255 = vmatmul.mubr.msk.f32.vlgmr.msra.gmra.mrb[6].mxu1 %vm1720_vm1, %v1711_v62 }
 0x49e   : > { %2589 = vmatpush3.bf16.msra.mxu1 %v2588_v21  ;;  %2273 = vmatprep.mubr.msk.f32.mxu1 %vm3180_vm0, %v3178_v0  ;;  %v1817_v0 = vld [vmem:[%s3862_s13 + $0x30] sm:$0xff] }
 0x49f   : > { %2590 = vmatprep.subr.bf16.mxu1 %v3179_v35  ;;  %v2597_v7 = vpack.c.bf16 %v1818_v6, %v1817_v0 }
 0x4a2   : > { %2592 = vmatpush3.bf16.msra.mxu1 %v2591_v2 }
 0x4a3   : > { %2593 = vmatprep.subr.bf16.mxu1 %v3179_v35 }
 0x4a6   : > { %2595 = vmatpush3.bf16.msra.mxu1 %v2594_v5 }
 0x4a7   : > { %2596 = vmatprep.subr.bf16.mxu1 %v3179_v35 }
 0x4aa   : > { %2598 = vmatpush3.bf16.msra.mxu1 %v2597_v7 }
 0x570   : > { %v1790_v9 = vpop.f32.mrb[6].mxu1 }
 0x571   : > { %v1801_v11 = vmul.f32 %v2204_v8, %v1790_v9  ;;  %v2256_v12 = vpop.f32.mrb[7].mxu1 }
 0x573   : > { %v1809_v13 = vadd.f32 %v2205_v10, %v1801_v11 }
 0x575   : > { %v1810_v14 = vmax.f32 %v1809_v13, 0.0 }
 0x577   : > { %2274 = vmatmul.mubr.msk.f32.vlgmr.msra.gmra.mrb[8].mxu1 %vm1720_vm1, %v1810_v14 }
 0x64a   : > { %v1888_v26 = vpop.f32.mrb[8].mxu1 }
 0x64b   : > { %v1899_v28 = vmul.f32 %v2207_v25, %v1888_v26  ;;  %v2275_v29 = vpop.f32.mrb[9].mxu1 }
 0x64d   : > { %v1907_v20 = vadd.f32 %v2208_v27, %v1899_v28 }
 0x64f   : > { %v1908_v30 = vmax.f32 %v1907_v20, 0.0 }
 0x651   : > { %2285 = vmatmul.mubr.msk.f32.vlgmr.msra.gmra.mrb[8].mxu0 %vm1920_vm2, %v1908_v30 }
 0x724   : > { %v1990_v32 = vpop.f32.mrb[8].mxu0 }
 0x725   : > { %v1991_v33 = vadd.f32 %v2209_v31, %v1990_v32  ;;  %v2286_v22 = vpop.f32.mrb[9].mxu0 }
 0x727   : > { %1994 = vst [vmem:[%s712_s22] sm:$0xff] %v1991_v33 }
 0x728   : > { %3086 = shalt.err (!%p3083_p10)
}
 0x729   : > { %s3087_s27 = scalar_lea.hbm %s3807_s2, 128  ;;  %s3091_s4 = scalar_lea.hbm %s3930_s6, 256 }
 0x72a   : > { %p3088_p2 = scmp.ne.s32.totalorder %s3807_s2, %s3087_s27  ;;  %p3092_p7 = scmp.lt.u32.totalorder %s3807_s2, %s3930_s6 }
 0x72b   : > { %p3093_p8 = scmp.lt.u32.totalorder %s3091_s4, %s3087_s27  ;;  %p3095_p13 = scmp.lt.u32.totalorder %s3087_s27, %s3807_s2 }
 0x72c   : > { %p3089_p3 = pnand %p3088_p2, %p3931_p1 }
 0x72d   : > { %p3094_p11 = por %p3093_p8, %p3092_p7 }
 0x72e   : > { %p3090_p4 = pneg %p3089_p3 }
 0x72f   : > { %p3096_p0 = por %p3095_p13, %p3094_p11 }
 0x731   : > { %p3097_p6 = pnand %p3096_p0, %p3090_p4 }
 0x733   : > { %3100 = shalt.err (!%p3097_p6)
}
 0x734   : > { %2649 = dma.vmem_to_hbm [thread:$0]  (%p3931_p1), %s3809_s24, 128, %s3807_s2, %s1996_s15  }
 0x735 PF: > { %s3932_s22 = sld [smem:[#allocation30_spill]]  ;;  %s3933_s21 = sld [smem:[#allocation28_spill]] }
 0x736   : > { %s3934_s19 = sld [smem:[#allocation34_spill]] }
 0x73b   : > { %p2711_p5 = scmp.ge.s32.totalorder %s3932_s22, 2  ;;  %s2021_s30 = sand.u32 1, %s3933_s21  }
 0x73c   : > { %p3935_p9 = scmp.ne.s32.totalorder %s3934_s19, 0  ;;  %s2022_s0 = scalar_lea.sflag [#allocation4], %s2021_s30 }
 0x73e   : > { %p2686_p12 = pnand %p2711_p5, %p3935_p9 }
 0x740   : > { %3142 = dma.done.wait (!%p2686_p12), %s2022_s0, 128  }
 0x741   : > { %3144 = vsyncadd (!%p2686_p12), %s2022_s0, 4294967168  ;;  %s3936_s30 = sld [smem:[#allocation31_spill]]  ;;  %s3937_s23 = sld [smem:[#allocation29_spill]] }
 0x742   : > { %s3938_s29 = sld [smem:[#allocation32_spill]]  ;;  %s3939_s27 = smov %s3151_s28 }
 0x747   : > { %p34_p10 = scmp.ge.s32.totalorder %s3936_s30, 4   ;;  %s3940_s28 = smov %s3937_s23 }
 0x749   :  { %36 = sbr.rel (!%p34_p10) target bundleno = 18 (0x12), region = 172 }
 0x750   :  { %2027 = vsyncpa [#allocation3], 1 }
 0x751   :  { %2029 = vsyncpa [#allocation3 + $0x1], 1 }
 0x752   :  { %2030 = vsyncpa [#allocation6], 1 }
 0x753   :  { %2031 = vsyncpa [#allocation9], 1 }
 0x754   :  { %2032 = vsyncpa [#allocation12], 1 }
 0x755   :  { %2033 = vsyncpa [#allocation15], 1 }
 0x756   :  { %2034 = vsyncpa [#allocation18], 1 }
 0x757   :  { %2035 = vsyncpa [#allocation4], 1 }
 0x758   :  { %2037 = vsyncpa [#allocation4 + $0x1], 1 }

</bundles_post_ra>
